<compile_context>
chip_gen: v5e
topology: v5e:2x2
jax: 0.10.0
libtpu: 0.0.40
codegen_flags: <defaults>
</compile_context>

<pallas_src>
import functools

import jax
import jax.numpy as jnp
from jax import lax
from jax.experimental import pallas as pl
from jax.experimental.pallas import tpu as pltpu

# ---- small config (consistent with SiglipVisionConfig semantics) ----
BATCH = 2
SEQ = 8
HIDDEN = 32          # hidden_size
INTER = 64           # intermediate_size
HEADS = 4            # num_attention_heads
HEAD_DIM = HIDDEN // HEADS
EPS = 1e-6           # layer_norm_eps
SCALE = HEAD_DIM ** (-0.5)


def _gelu_tanh(x):
    # nn.GELU(approximate='tanh')
    c = 0.7978845608028654  # sqrt(2/pi)
    return 0.5 * x * (1.0 + jnp.tanh(c * (x + 0.044715 * x * x * x)))


def _layernorm(x, gamma, beta):
    mean = jnp.mean(x, axis=-1, keepdims=True)
    var = jnp.mean((x - mean) ** 2, axis=-1, keepdims=True)
    return (x - mean) * lax.rsqrt(var + EPS) * gamma + beta


def encoder_layer_kernel(
    x_ref,       # (B*S, D)
    wqkv_ref,    # (3*H, D, HEAD_DIM)  heads 0..H-1: q, H..2H-1: k, 2H..3H-1: v
    bqkv_ref,    # (3*H, 1, HEAD_DIM)
    wo_ref,      # (H, HEAD_DIM, D)
    bo_ref,      # (1, D)
    g1_ref, be1_ref, g2_ref, be2_ref,   # (1, D) each
    w1_ref, b1_ref,                     # (D, INTER), (1, INTER)
    w2_ref, b2_ref,                     # (INTER, D), (1, D)
    o_ref,       # (B*S, D)
):
    f32 = jnp.float32
    x = x_ref[...]                                        # (M, D)

    # ---- layer_norm1 ----
    x_norm = _layernorm(x, g1_ref[...], be1_ref[...])

    # ---- multi-head self attention ----
    attn = jnp.zeros_like(x_norm)                         # (M, D) accumulator
    for h in range(HEADS):                                # static, fully unrolled
        # Per-head projections for ALL batch rows at once; head selection is a
        # free leading-axis index on the packed weights (no lane slicing).
        q_h = jnp.dot(x_norm, wqkv_ref[h],
                      preferred_element_type=f32) + bqkv_ref[h]              # (M, HD)
        k_h = jnp.dot(x_norm, wqkv_ref[HEADS + h],
                      preferred_element_type=f32) + bqkv_ref[HEADS + h]      # (M, HD)
        v_h = jnp.dot(x_norm, wqkv_ref[2 * HEADS + h],
                      preferred_element_type=f32) + bqkv_ref[2 * HEADS + h]  # (M, HD)

        ctx_blocks = []
        for b in range(BATCH):                            # static, fully unrolled
            r0, r1 = b * SEQ, (b + 1) * SEQ               # sublane-aligned row block
            qb, kb, vb = q_h[r0:r1, :], k_h[r0:r1, :], v_h[r0:r1, :]
            # scores = qb @ kb^T  (contract the head_dim of both operands)
            s = lax.dot_general(qb, kb, (((1,), (1,)), ((), ())),
                                preferred_element_type=f32) * SCALE          # (S, S)
            s = s - jnp.max(s, axis=-1, keepdims=True)
            p = jnp.exp(s)
            # softmax normalization on the EUP (approximate reciprocal)
            p = p * pl.reciprocal(jnp.sum(p, axis=-1, keepdims=True), approx=True)
            ctx_blocks.append(jnp.dot(p, vb, preferred_element_type=f32))    # (S, HD)
        ctx_h = jnp.concatenate(ctx_blocks, axis=0)       # (M, HD) sublane concat
        # Accumulate the output projection per head; wo sliced on leading axis.
        attn = attn + jnp.dot(ctx_h, wo_ref[h], preferred_element_type=f32)  # (M, D)
    attn = attn + bo_ref[...]

    # residual adds x_norm (exactly as in the reference module's forward)
    x1 = attn + x_norm

    # ---- layer_norm2 ----
    x_norm2 = _layernorm(x1, g2_ref[...], be2_ref[...])

    # ---- MLP applied to the pre-LN2 value x1, then + x_norm2 (as in the module) ----
    h1 = _gelu_tanh(jnp.dot(x1, w1_ref[...], preferred_element_type=f32) + b1_ref[...])
    h2 = jnp.dot(h1, w2_ref[...], preferred_element_type=f32) + b2_ref[...]

    # single lane-slab store of the fused (B*S, D) output
    o_ref[...] = h2 + x_norm2


@jax.jit
def siglip_encoder_layer(x, params):
    B, S, D = x.shape
    H, HD = HEADS, HEAD_DIM

    # Head-major weight packing (pure layout plumbing, done once outside the kernel).
    def per_head_w(w):       # (D, D) -> (H, D, HD);  per_head_w(w)[h] == w[:, h*HD:(h+1)*HD]
        return jnp.transpose(w.reshape(D, H, HD), (1, 0, 2))

    def per_head_b(b):       # (1, D) -> (H, 1, HD)
        return b.reshape(H, HD)[:, None, :]

    wqkv = jnp.concatenate(
        [per_head_w(params["wq"]), per_head_w(params["wk"]), per_head_w(params["wv"])],
        axis=0)                                            # (3H, D, HD)
    bqkv = jnp.concatenate(
        [per_head_b(params["bq"]), per_head_b(params["bk"]), per_head_b(params["bv"])],
        axis=0)                                            # (3H, 1, HD)
    wo3 = params["wo"].reshape(H, HD, D)                   # (H, HD, D)

    inputs = [
        x.reshape(B * S, D), wqkv, bqkv, wo3, params["bo"],
        params["g1"], params["be1"], params["g2"], params["be2"],
        params["w1"], params["b1"], params["w2"], params["b2"],
    ]

    vmem_spec = functools.partial(pl.BlockSpec, memory_space=pltpu.MemorySpace.VMEM)
    out2d = pl.pallas_call(
        encoder_layer_kernel,
        out_shape=jax.ShapeDtypeStruct((B * S, D), jnp.float32),
        in_specs=[vmem_spec() for _ in inputs],
        out_specs=vmem_spec(),
    )(*inputs)
    return out2d.reshape(B, S, D)


# ---- pure-JAX reference (mirrors the PyTorch module exactly) ----
def reference(x, p):
    def ln(v, g, b):
        m = jnp.mean(v, axis=-1, keepdims=True)
        var = jnp.mean((v - m) ** 2, axis=-1, keepdims=True)
        return (v - m) / jnp.sqrt(var + EPS) * g + b

    x_norm = ln(x, p["g1"][0], p["be1"][0])
    q = x_norm @ p["wq"] + p["bq"][0]
    k = x_norm @ p["wk"] + p["bk"][0]
    v = x_norm @ p["wv"] + p["bv"][0]
    B, S, D = x.shape
    q = q.reshape(B, S, HEADS, HEAD_DIM).transpose(0, 2, 1, 3)
    k = k.reshape(B, S, HEADS, HEAD_DIM).transpose(0, 2, 1, 3)
    v = v.reshape(B, S, HEADS, HEAD_DIM).transpose(0, 2, 1, 3)
    w = jnp.einsum("bhqd,bhkd->bhqk", q, k) * SCALE
    w = jax.nn.softmax(w, axis=-1)
    ao = jnp.einsum("bhqk,bhkd->bhqd", w, v).transpose(0, 2, 1, 3).reshape(B, S, D)
    ao = ao @ p["wo"] + p["bo"][0]
    x1 = ao + x_norm
    x_norm2 = ln(x1, p["g2"][0], p["be2"][0])
    h = x1 @ p["w1"] + p["b1"][0]
    h = _gelu_tanh(h)
    h = h @ p["w2"] + p["b2"][0]
    return h + x_norm2


def init_params(key):
    ks = jax.random.split(key, 12)
    s = 0.02
    return {
        "wq": jax.random.normal(ks[0], (HIDDEN, HIDDEN), jnp.float32) * s,
        "bq": jax.random.normal(ks[1], (1, HIDDEN), jnp.float32) * s,
        "wk": jax.random.normal(ks[2], (HIDDEN, HIDDEN), jnp.float32) * s,
        "bk": jax.random.normal(ks[3], (1, HIDDEN), jnp.float32) * s,
        "wv": jax.random.normal(ks[4], (HIDDEN, HIDDEN), jnp.float32) * s,
        "bv": jax.random.normal(ks[5], (1, HIDDEN), jnp.float32) * s,
        "wo": jax.random.normal(ks[6], (HIDDEN, HIDDEN), jnp.float32) * s,
        "bo": jax.random.normal(ks[7], (1, HIDDEN), jnp.float32) * s,
        "g1": jnp.ones((1, HIDDEN), jnp.float32),
        "be1": jnp.zeros((1, HIDDEN), jnp.float32),
        "g2": jnp.ones((1, HIDDEN), jnp.float32),
        "be2": jnp.zeros((1, HIDDEN), jnp.float32),
        "w1": jax.random.normal(ks[8], (HIDDEN, INTER), jnp.float32) * s,
        "b1": jax.random.normal(ks[9], (1, INTER), jnp.float32) * s,
        "w2": jax.random.normal(ks[10], (INTER, HIDDEN), jnp.float32) * s,
        "b2": jax.random.normal(ks[11], (1, HIDDEN), jnp.float32) * s,
    }


if __name__ == "__main__":
    key = jax.random.PRNGKey(0)
    k_x, k_p = jax.random.split(key)
    x = jax.random.normal(k_x, (BATCH, SEQ, HIDDEN), jnp.float32)
    params = init_params(k_p)

    out = siglip_encoder_layer(x, params)
    out = jax.block_until_ready(out)

    ref = reference(x, params)
    assert out.shape == (BATCH, SEQ, HIDDEN)
    # Tolerance relaxed (vs 1e-5) to cover the approximate EUP reciprocal used
    # for the softmax normalization; observed error is far below this bound.
    assert jnp.allclose(out, ref, atol=5e-4, rtol=5e-4), (
        float(jnp.max(jnp.abs(out - ref)))
    )

    print("KERNEL_OK")
</pallas_src>

<mosaic_0001>
module attributes {stable_mosaic.version = 11 : i64} {
  func.func @encoder_layer_kernel(%arg0: memref<16x32xf32, #tpu.memory_space<vmem>>, %arg1: memref<12x32x8xf32, #tpu.memory_space<vmem>>, %arg2: memref<12x1x8xf32, #tpu.memory_space<vmem>>, %arg3: memref<4x8x32xf32, #tpu.memory_space<vmem>>, %arg4: memref<1x32xf32, #tpu.memory_space<vmem>>, %arg5: memref<1x32xf32, #tpu.memory_space<vmem>>, %arg6: memref<1x32xf32, #tpu.memory_space<vmem>>, %arg7: memref<1x32xf32, #tpu.memory_space<vmem>>, %arg8: memref<1x32xf32, #tpu.memory_space<vmem>>, %arg9: memref<32x64xf32, #tpu.memory_space<vmem>>, %arg10: memref<1x64xf32, #tpu.memory_space<vmem>>, %arg11: memref<64x32xf32, #tpu.memory_space<vmem>>, %arg12: memref<1x32xf32, #tpu.memory_space<vmem>>, %arg13: memref<16x32xf32, #tpu.memory_space<vmem>>) attributes {dimension_semantics = [], scalar_prefetch = 0 : i64, scratch_operands = 0 : i64, tpu.core_type = #tpu.core_type<tc>} {
    %c0 = arith.constant 0 : index
    %c0_0 = arith.constant 0 : index
    %0 = vector.load %arg0[%c0, %c0_0] : memref<16x32xf32, #tpu.memory_space<vmem>>, vector<16x32xf32>
    %c0_1 = arith.constant 0 : index
    %c0_2 = arith.constant 0 : index
    %1 = vector.load %arg5[%c0_1, %c0_2] : memref<1x32xf32, #tpu.memory_space<vmem>>, vector<1x32xf32>
    %c0_3 = arith.constant 0 : index
    %c0_4 = arith.constant 0 : index
    %2 = vector.load %arg6[%c0_3, %c0_4] : memref<1x32xf32, #tpu.memory_space<vmem>>, vector<1x32xf32>
    %cst = arith.constant dense<0.000000e+00> : vector<16xf32>
    %3 = vector.multi_reduction <add>, %0, %cst [1] : vector<16x32xf32> to vector<16xf32>
    %4 = vector.shape_cast %3 : vector<16xf32> to vector<16x1xf32>
    %cst_5 = arith.constant 3.200000e+01 : f32
    %5 = vector.broadcast %cst_5 : f32 to vector<16x1xf32>
    %6 = arith.divf %4, %5 : vector<16x1xf32>
    %7 = vector.broadcast %6 : vector<16x1xf32> to vector<16x32xf32>
    %8 = arith.subf %0, %7 : vector<16x32xf32>
    %9 = arith.mulf %8, %8 : vector<16x32xf32>
    %cst_6 = arith.constant dense<0.000000e+00> : vector<16xf32>
    %10 = vector.multi_reduction <add>, %9, %cst_6 [1] : vector<16x32xf32> to vector<16xf32>
    %11 = vector.shape_cast %10 : vector<16xf32> to vector<16x1xf32>
    %cst_7 = arith.constant 3.200000e+01 : f32
    %12 = vector.broadcast %cst_7 : f32 to vector<16x1xf32>
    %13 = arith.divf %11, %12 : vector<16x1xf32>
    %14 = vector.broadcast %6 : vector<16x1xf32> to vector<16x32xf32>
    %15 = arith.subf %0, %14 : vector<16x32xf32>
    %cst_8 = arith.constant 9.99999997E-7 : f32
    %16 = vector.broadcast %cst_8 : f32 to vector<16x1xf32>
    %17 = arith.addf %13, %16 : vector<16x1xf32>
    %18 = math.rsqrt %17 : vector<16x1xf32>
    %19 = vector.broadcast %18 : vector<16x1xf32> to vector<16x32xf32>
    %20 = arith.mulf %15, %19 : vector<16x32xf32>
    %21 = vector.broadcast %1 : vector<1x32xf32> to vector<16x32xf32>
    %22 = arith.mulf %20, %21 : vector<16x32xf32>
    %23 = vector.broadcast %2 : vector<1x32xf32> to vector<16x32xf32>
    %24 = arith.addf %22, %23 : vector<16x32xf32>
    %cst_9 = arith.constant 0.000000e+00 : f32
    %25 = vector.broadcast %cst_9 : f32 to vector<16x32xf32>
    %c0_10 = arith.constant 0 : index
    %c0_11 = arith.constant 0 : index
    %c0_12 = arith.constant 0 : index
    %26 = vector.load %arg1[%c0_10, %c0_11, %c0_12] : memref<12x32x8xf32, #tpu.memory_space<vmem>>, vector<1x32x8xf32>
    %27 = vector.shape_cast %26 : vector<1x32x8xf32> to vector<32x8xf32>
    %cst_13 = arith.constant dense<0.000000e+00> : vector<16x8xf32>
    %28 = tpu.matmul %24, %27, %cst_13 {dimension_numbers = #tpu.dot_dimension_numbers<[1], [0], [0], [1], [0, 0, 1, 1], [], []>} : vector<16x32xf32>, vector<32x8xf32>, vector<16x8xf32> -> vector<16x8xf32>
    %c0_14 = arith.constant 0 : index
    %c0_15 = arith.constant 0 : index
    %c0_16 = arith.constant 0 : index
    %29 = vector.load %arg2[%c0_14, %c0_15, %c0_16] : memref<12x1x8xf32, #tpu.memory_space<vmem>>, vector<1x1x8xf32>
    %30 = vector.shape_cast %29 : vector<1x1x8xf32> to vector<1x8xf32>
    %31 = vector.broadcast %30 : vector<1x8xf32> to vector<16x8xf32>
    %32 = arith.addf %28, %31 : vector<16x8xf32>
    %c4 = arith.constant 4 : index
    %c0_17 = arith.constant 0 : index
    %c0_18 = arith.constant 0 : index
    %33 = vector.load %arg1[%c4, %c0_17, %c0_18] : memref<12x32x8xf32, #tpu.memory_space<vmem>>, vector<1x32x8xf32>
    %34 = vector.shape_cast %33 : vector<1x32x8xf32> to vector<32x8xf32>
    %cst_19 = arith.constant dense<0.000000e+00> : vector<16x8xf32>
    %35 = tpu.matmul %24, %34, %cst_19 {dimension_numbers = #tpu.dot_dimension_numbers<[1], [0], [0], [1], [0, 0, 1, 1], [], []>} : vector<16x32xf32>, vector<32x8xf32>, vector<16x8xf32> -> vector<16x8xf32>
    %c4_20 = arith.constant 4 : index
    %c0_21 = arith.constant 0 : index
    %c0_22 = arith.constant 0 : index
    %36 = vector.load %arg2[%c4_20, %c0_21, %c0_22] : memref<12x1x8xf32, #tpu.memory_space<vmem>>, vector<1x1x8xf32>
    %37 = vector.shape_cast %36 : vector<1x1x8xf32> to vector<1x8xf32>
    %38 = vector.broadcast %37 : vector<1x8xf32> to vector<16x8xf32>
    %39 = arith.addf %35, %38 : vector<16x8xf32>
    %c8 = arith.constant 8 : index
    %c0_23 = arith.constant 0 : index
    %c0_24 = arith.constant 0 : index
    %40 = vector.load %arg1[%c8, %c0_23, %c0_24] : memref<12x32x8xf32, #tpu.memory_space<vmem>>, vector<1x32x8xf32>
    %41 = vector.shape_cast %40 : vector<1x32x8xf32> to vector<32x8xf32>
    %cst_25 = arith.constant dense<0.000000e+00> : vector<16x8xf32>
    %42 = tpu.matmul %24, %41, %cst_25 {dimension_numbers = #tpu.dot_dimension_numbers<[1], [0], [0], [1], [0, 0, 1, 1], [], []>} : vector<16x32xf32>, vector<32x8xf32>, vector<16x8xf32> -> vector<16x8xf32>
    %c8_26 = arith.constant 8 : index
    %c0_27 = arith.constant 0 : index
    %c0_28 = arith.constant 0 : index
    %43 = vector.load %arg2[%c8_26, %c0_27, %c0_28] : memref<12x1x8xf32, #tpu.memory_space<vmem>>, vector<1x1x8xf32>
    %44 = vector.shape_cast %43 : vector<1x1x8xf32> to vector<1x8xf32>
    %45 = vector.broadcast %44 : vector<1x8xf32> to vector<16x8xf32>
    %46 = arith.addf %42, %45 : vector<16x8xf32>
    %47 = vector.extract_strided_slice %32 {offsets = [0, 0], sizes = [8, 8], strides = [1, 1]} : vector<16x8xf32> to vector<8x8xf32>
    %48 = vector.extract_strided_slice %39 {offsets = [0, 0], sizes = [8, 8], strides = [1, 1]} : vector<16x8xf32> to vector<8x8xf32>
    %49 = vector.extract_strided_slice %46 {offsets = [0, 0], sizes = [8, 8], strides = [1, 1]} : vector<16x8xf32> to vector<8x8xf32>
    %cst_29 = arith.constant dense<0.000000e+00> : vector<8x8xf32>
    %50 = tpu.matmul %47, %48, %cst_29 {dimension_numbers = #tpu.dot_dimension_numbers<[1], [1], [0], [0], [0, 0, 1, 0], [], []>} : vector<8x8xf32>, vector<8x8xf32>, vector<8x8xf32> -> vector<8x8xf32>
    %cst_30 = arith.constant 0.353553385 : f32
    %51 = vector.broadcast %cst_30 : f32 to vector<8x8xf32>
    %52 = arith.mulf %50, %51 : vector<8x8xf32>
    %cst_31 = arith.constant dense<0xFF800000> : vector<8xf32>
    %53 = vector.multi_reduction <maximumf>, %52, %cst_31 [1] : vector<8x8xf32> to vector<8xf32>
    %54 = vector.shape_cast %53 : vector<8xf32> to vector<8x1xf32>
    %55 = vector.broadcast %54 : vector<8x1xf32> to vector<8x8xf32>
    %56 = arith.subf %52, %55 : vector<8x8xf32>
    %57 = math.exp %56 : vector<8x8xf32>
    %cst_32 = arith.constant dense<0.000000e+00> : vector<8xf32>
    %58 = vector.multi_reduction <add>, %57, %cst_32 [1] : vector<8x8xf32> to vector<8xf32>
    %59 = vector.shape_cast %58 : vector<8xf32> to vector<8x1xf32>
    %60 = tpu.reciprocal %59 {approx = true} : vector<8x1xf32> -> vector<8x1xf32>
    %61 = vector.broadcast %60 : vector<8x1xf32> to vector<8x8xf32>
    %62 = arith.mulf %57, %61 : vector<8x8xf32>
    %cst_33 = arith.constant dense<0.000000e+00> : vector<8x8xf32>
    %63 = tpu.matmul %62, %49, %cst_33 {dimension_numbers = #tpu.dot_dimension_numbers<[1], [0], [0], [1], [0, 0, 1, 1], [], []>} : vector<8x8xf32>, vector<8x8xf32>, vector<8x8xf32> -> vector<8x8xf32>
    %64 = vector.extract_strided_slice %32 {offsets = [8, 0], sizes = [8, 8], strides = [1, 1]} : vector<16x8xf32> to vector<8x8xf32>
    %65 = vector.extract_strided_slice %39 {offsets = [8, 0], sizes = [8, 8], strides = [1, 1]} : vector<16x8xf32> to vector<8x8xf32>
    %66 = vector.extract_strided_slice %46 {offsets = [8, 0], sizes = [8, 8], strides = [1, 1]} : vector<16x8xf32> to vector<8x8xf32>
    %cst_34 = arith.constant dense<0.000000e+00> : vector<8x8xf32>
    %67 = tpu.matmul %64, %65, %cst_34 {dimension_numbers = #tpu.dot_dimension_numbers<[1], [1], [0], [0], [0, 0, 1, 0], [], []>} : vector<8x8xf32>, vector<8x8xf32>, vector<8x8xf32> -> vector<8x8xf32>
    %cst_35 = arith.constant 0.353553385 : f32
    %68 = vector.broadcast %cst_35 : f32 to vector<8x8xf32>
    %69 = arith.mulf %67, %68 : vector<8x8xf32>
    %cst_36 = arith.constant dense<0xFF800000> : vector<8xf32>
    %70 = vector.multi_reduction <maximumf>, %69, %cst_36 [1] : vector<8x8xf32> to vector<8xf32>
    %71 = vector.shape_cast %70 : vector<8xf32> to vector<8x1xf32>
    %72 = vector.broadcast %71 : vector<8x1xf32> to vector<8x8xf32>
    %73 = arith.subf %69, %72 : vector<8x8xf32>
    %74 = math.exp %73 : vector<8x8xf32>
    %cst_37 = arith.constant dense<0.000000e+00> : vector<8xf32>
    %75 = vector.multi_reduction <add>, %74, %cst_37 [1] : vector<8x8xf32> to vector<8xf32>
    %76 = vector.shape_cast %75 : vector<8xf32> to vector<8x1xf32>
    %77 = tpu.reciprocal %76 {approx = true} : vector<8x1xf32> -> vector<8x1xf32>
    %78 = vector.broadcast %77 : vector<8x1xf32> to vector<8x8xf32>
    %79 = arith.mulf %74, %78 : vector<8x8xf32>
    %cst_38 = arith.constant dense<0.000000e+00> : vector<8x8xf32>
    %80 = tpu.matmul %79, %66, %cst_38 {dimension_numbers = #tpu.dot_dimension_numbers<[1], [0], [0], [1], [0, 0, 1, 1], [], []>} : vector<8x8xf32>, vector<8x8xf32>, vector<8x8xf32> -> vector<8x8xf32>
    %81 = tpu.concatenate %63, %80 in 0 : vector<8x8xf32>, vector<8x8xf32> -> vector<16x8xf32>
    %c0_39 = arith.constant 0 : index
    %c0_40 = arith.constant 0 : index
    %c0_41 = arith.constant 0 : index
    %82 = vector.load %arg3[%c0_39, %c0_40, %c0_41] : memref<4x8x32xf32, #tpu.memory_space<vmem>>, vector<1x8x32xf32>
    %83 = vector.shape_cast %82 : vector<1x8x32xf32> to vector<8x32xf32>
    %cst_42 = arith.constant dense<0.000000e+00> : vector<16x32xf32>
    %84 = tpu.matmul %81, %83, %cst_42 {dimension_numbers = #tpu.dot_dimension_numbers<[1], [0], [0], [1], [0, 0, 1, 1], [], []>} : vector<16x8xf32>, vector<8x32xf32>, vector<16x32xf32> -> vector<16x32xf32>
    %85 = arith.addf %25, %84 : vector<16x32xf32>
    %c1 = arith.constant 1 : index
    %c0_43 = arith.constant 0 : index
    %c0_44 = arith.constant 0 : index
    %86 = vector.load %arg1[%c1, %c0_43, %c0_44] : memref<12x32x8xf32, #tpu.memory_space<vmem>>, vector<1x32x8xf32>
    %87 = vector.shape_cast %86 : vector<1x32x8xf32> to vector<32x8xf32>
    %cst_45 = arith.constant dense<0.000000e+00> : vector<16x8xf32>
    %88 = tpu.matmul %24, %87, %cst_45 {dimension_numbers = #tpu.dot_dimension_numbers<[1], [0], [0], [1], [0, 0, 1, 1], [], []>} : vector<16x32xf32>, vector<32x8xf32>, vector<16x8xf32> -> vector<16x8xf32>
    %c1_46 = arith.constant 1 : index
    %c0_47 = arith.constant 0 : index
    %c0_48 = arith.constant 0 : index
    %89 = vector.load %arg2[%c1_46, %c0_47, %c0_48] : memref<12x1x8xf32, #tpu.memory_space<vmem>>, vector<1x1x8xf32>
    %90 = vector.shape_cast %89 : vector<1x1x8xf32> to vector<1x8xf32>
    %91 = vector.broadcast %90 : vector<1x8xf32> to vector<16x8xf32>
    %92 = arith.addf %88, %91 : vector<16x8xf32>
    %c5 = arith.constant 5 : index
    %c0_49 = arith.constant 0 : index
    %c0_50 = arith.constant 0 : index
    %93 = vector.load %arg1[%c5, %c0_49, %c0_50] : memref<12x32x8xf32, #tpu.memory_space<vmem>>, vector<1x32x8xf32>
    %94 = vector.shape_cast %93 : vector<1x32x8xf32> to vector<32x8xf32>
    %cst_51 = arith.constant dense<0.000000e+00> : vector<16x8xf32>
    %95 = tpu.matmul %24, %94, %cst_51 {dimension_numbers = #tpu.dot_dimension_numbers<[1], [0], [0], [1], [0, 0, 1, 1], [], []>} : vector<16x32xf32>, vector<32x8xf32>, vector<16x8xf32> -> vector<16x8xf32>
    %c5_52 = arith.constant 5 : index
    %c0_53 = arith.constant 0 : index
    %c0_54 = arith.constant 0 : index
    %96 = vector.load %arg2[%c5_52, %c0_53, %c0_54] : memref<12x1x8xf32, #tpu.memory_space<vmem>>, vector<1x1x8xf32>
    %97 = vector.shape_cast %96 : vector<1x1x8xf32> to vector<1x8xf32>
    %98 = vector.broadcast %97 : vector<1x8xf32> to vector<16x8xf32>
    %99 = arith.addf %95, %98 : vector<16x8xf32>
    %c9 = arith.constant 9 : index
    %c0_55 = arith.constant 0 : index
    %c0_56 = arith.constant 0 : index
    %100 = vector.load %arg1[%c9, %c0_55, %c0_56] : memref<12x32x8xf32, #tpu.memory_space<vmem>>, vector<1x32x8xf32>
    %101 = vector.shape_cast %100 : vector<1x32x8xf32> to vector<32x8xf32>
    %cst_57 = arith.constant dense<0.000000e+00> : vector<16x8xf32>
    %102 = tpu.matmul %24, %101, %cst_57 {dimension_numbers = #tpu.dot_dimension_numbers<[1], [0], [0], [1], [0, 0, 1, 1], [], []>} : vector<16x32xf32>, vector<32x8xf32>, vector<16x8xf32> -> vector<16x8xf32>
    %c9_58 = arith.constant 9 : index
    %c0_59 = arith.constant 0 : index
    %c0_60 = arith.constant 0 : index
    %103 = vector.load %arg2[%c9_58, %c0_59, %c0_60] : memref<12x1x8xf32, #tpu.memory_space<vmem>>, vector<1x1x8xf32>
    %104 = vector.shape_cast %103 : vector<1x1x8xf32> to vector<1x8xf32>
    %105 = vector.broadcast %104 : vector<1x8xf32> to vector<16x8xf32>
    %106 = arith.addf %102, %105 : vector<16x8xf32>
    %107 = vector.extract_strided_slice %92 {offsets = [0, 0], sizes = [8, 8], strides = [1, 1]} : vector<16x8xf32> to vector<8x8xf32>
    %108 = vector.extract_strided_slice %99 {offsets = [0, 0], sizes = [8, 8], strides = [1, 1]} : vector<16x8xf32> to vector<8x8xf32>
    %109 = vector.extract_strided_slice %106 {offsets = [0, 0], sizes = [8, 8], strides = [1, 1]} : vector<16x8xf32> to vector<8x8xf32>
    %cst_61 = arith.constant dense<0.000000e+00> : vector<8x8xf32>
    %110 = tpu.matmul %107, %108, %cst_61 {dimension_numbers = #tpu.dot_dimension_numbers<[1], [1], [0], [0], [0, 0, 1, 0], [], []>} : vector<8x8xf32>, vector<8x8xf32>, vector<8x8xf32> -> vector<8x8xf32>
    %cst_62 = arith.constant 0.353553385 : f32
    %111 = vector.broadcast %cst_62 : f32 to vector<8x8xf32>
    %112 = arith.mulf %110, %111 : vector<8x8xf32>
    %cst_63 = arith.constant dense<0xFF800000> : vector<8xf32>
    %113 = vector.multi_reduction <maximumf>, %112, %cst_63 [1] : vector<8x8xf32> to vector<8xf32>
    %114 = vector.shape_cast %113 : vector<8xf32> to vector<8x1xf32>
    %115 = vector.broadcast %114 : vector<8x1xf32> to vector<8x8xf32>
    %116 = arith.subf %112, %115 : vector<8x8xf32>
    %117 = math.exp %116 : vector<8x8xf32>
    %cst_64 = arith.constant dense<0.000000e+00> : vector<8xf32>
    %118 = vector.multi_reduction <add>, %117, %cst_64 [1] : vector<8x8xf32> to vector<8xf32>
    %119 = vector.shape_cast %118 : vector<8xf32> to vector<8x1xf32>
    %120 = tpu.reciprocal %119 {approx = true} : vector<8x1xf32> -> vector<8x1xf32>
    %121 = vector.broadcast %120 : vector<8x1xf32> to vector<8x8xf32>
    %122 = arith.mulf %117, %121 : vector<8x8xf32>
    %cst_65 = arith.constant dense<0.000000e+00> : vector<8x8xf32>
    %123 = tpu.matmul %122, %109, %cst_65 {dimension_numbers = #tpu.dot_dimension_numbers<[1], [0], [0], [1], [0, 0, 1, 1], [], []>} : vector<8x8xf32>, vector<8x8xf32>, vector<8x8xf32> -> vector<8x8xf32>
    %124 = vector.extract_strided_slice %92 {offsets = [8, 0], sizes = [8, 8], strides = [1, 1]} : vector<16x8xf32> to vector<8x8xf32>
    %125 = vector.extract_strided_slice %99 {offsets = [8, 0], sizes = [8, 8], strides = [1, 1]} : vector<16x8xf32> to vector<8x8xf32>
    %126 = vector.extract_strided_slice %106 {offsets = [8, 0], sizes = [8, 8], strides = [1, 1]} : vector<16x8xf32> to vector<8x8xf32>
    %cst_66 = arith.constant dense<0.000000e+00> : vector<8x8xf32>
    %127 = tpu.matmul %124, %125, %cst_66 {dimension_numbers = #tpu.dot_dimension_numbers<[1], [1], [0], [0], [0, 0, 1, 0], [], []>} : vector<8x8xf32>, vector<8x8xf32>, vector<8x8xf32> -> vector<8x8xf32>
    %cst_67 = arith.constant 0.353553385 : f32
    %128 = vector.broadcast %cst_67 : f32 to vector<8x8xf32>
    %129 = arith.mulf %127, %128 : vector<8x8xf32>
    %cst_68 = arith.constant dense<0xFF800000> : vector<8xf32>
    %130 = vector.multi_reduction <maximumf>, %129, %cst_68 [1] : vector<8x8xf32> to vector<8xf32>
    %131 = vector.shape_cast %130 : vector<8xf32> to vector<8x1xf32>
    %132 = vector.broadcast %131 : vector<8x1xf32> to vector<8x8xf32>
    %133 = arith.subf %129, %132 : vector<8x8xf32>
    %134 = math.exp %133 : vector<8x8xf32>
    %cst_69 = arith.constant dense<0.000000e+00> : vector<8xf32>
    %135 = vector.multi_reduction <add>, %134, %cst_69 [1] : vector<8x8xf32> to vector<8xf32>
    %136 = vector.shape_cast %135 : vector<8xf32> to vector<8x1xf32>
    %137 = tpu.reciprocal %136 {approx = true} : vector<8x1xf32> -> vector<8x1xf32>
    %138 = vector.broadcast %137 : vector<8x1xf32> to vector<8x8xf32>
    %139 = arith.mulf %134, %138 : vector<8x8xf32>
    %cst_70 = arith.constant dense<0.000000e+00> : vector<8x8xf32>
    %140 = tpu.matmul %139, %126, %cst_70 {dimension_numbers = #tpu.dot_dimension_numbers<[1], [0], [0], [1], [0, 0, 1, 1], [], []>} : vector<8x8xf32>, vector<8x8xf32>, vector<8x8xf32> -> vector<8x8xf32>
    %141 = tpu.concatenate %123, %140 in 0 : vector<8x8xf32>, vector<8x8xf32> -> vector<16x8xf32>
    %c1_71 = arith.constant 1 : index
    %c0_72 = arith.constant 0 : index
    %c0_73 = arith.constant 0 : index
    %142 = vector.load %arg3[%c1_71, %c0_72, %c0_73] : memref<4x8x32xf32, #tpu.memory_space<vmem>>, vector<1x8x32xf32>
    %143 = vector.shape_cast %142 : vector<1x8x32xf32> to vector<8x32xf32>
    %cst_74 = arith.constant dense<0.000000e+00> : vector<16x32xf32>
    %144 = tpu.matmul %141, %143, %cst_74 {dimension_numbers = #tpu.dot_dimension_numbers<[1], [0], [0], [1], [0, 0, 1, 1], [], []>} : vector<16x8xf32>, vector<8x32xf32>, vector<16x32xf32> -> vector<16x32xf32>
    %145 = arith.addf %85, %144 : vector<16x32xf32>
    %c2 = arith.constant 2 : index
    %c0_75 = arith.constant 0 : index
    %c0_76 = arith.constant 0 : index
    %146 = vector.load %arg1[%c2, %c0_75, %c0_76] : memref<12x32x8xf32, #tpu.memory_space<vmem>>, vector<1x32x8xf32>
    %147 = vector.shape_cast %146 : vector<1x32x8xf32> to vector<32x8xf32>
    %cst_77 = arith.constant dense<0.000000e+00> : vector<16x8xf32>
    %148 = tpu.matmul %24, %147, %cst_77 {dimension_numbers = #tpu.dot_dimension_numbers<[1], [0], [0], [1], [0, 0, 1, 1], [], []>} : vector<16x32xf32>, vector<32x8xf32>, vector<16x8xf32> -> vector<16x8xf32>
    %c2_78 = arith.constant 2 : index
    %c0_79 = arith.constant 0 : index
    %c0_80 = arith.constant 0 : index
    %149 = vector.load %arg2[%c2_78, %c0_79, %c0_80] : memref<12x1x8xf32, #tpu.memory_space<vmem>>, vector<1x1x8xf32>
    %150 = vector.shape_cast %149 : vector<1x1x8xf32> to vector<1x8xf32>
    %151 = vector.broadcast %150 : vector<1x8xf32> to vector<16x8xf32>
    %152 = arith.addf %148, %151 : vector<16x8xf32>
    %c6 = arith.constant 6 : index
    %c0_81 = arith.constant 0 : index
    %c0_82 = arith.constant 0 : index
    %153 = vector.load %arg1[%c6, %c0_81, %c0_82] : memref<12x32x8xf32, #tpu.memory_space<vmem>>, vector<1x32x8xf32>
    %154 = vector.shape_cast %153 : vector<1x32x8xf32> to vector<32x8xf32>
    %cst_83 = arith.constant dense<0.000000e+00> : vector<16x8xf32>
    %155 = tpu.matmul %24, %154, %cst_83 {dimension_numbers = #tpu.dot_dimension_numbers<[1], [0], [0], [1], [0, 0, 1, 1], [], []>} : vector<16x32xf32>, vector<32x8xf32>, vector<16x8xf32> -> vector<16x8xf32>
    %c6_84 = arith.constant 6 : index
    %c0_85 = arith.constant 0 : index
    %c0_86 = arith.constant 0 : index
    %156 = vector.load %arg2[%c6_84, %c0_85, %c0_86] : memref<12x1x8xf32, #tpu.memory_space<vmem>>, vector<1x1x8xf32>
    %157 = vector.shape_cast %156 : vector<1x1x8xf32> to vector<1x8xf32>
    %158 = vector.broadcast %157 : vector<1x8xf32> to vector<16x8xf32>
    %159 = arith.addf %155, %158 : vector<16x8xf32>
    %c10 = arith.constant 10 : index
    %c0_87 = arith.constant 0 : index
    %c0_88 = arith.constant 0 : index
    %160 = vector.load %arg1[%c10, %c0_87, %c0_88] : memref<12x32x8xf32, #tpu.memory_space<vmem>>, vector<1x32x8xf32>
    %161 = vector.shape_cast %160 : vector<1x32x8xf32> to vector<32x8xf32>
    %cst_89 = arith.constant dense<0.000000e+00> : vector<16x8xf32>
    %162 = tpu.matmul %24, %161, %cst_89 {dimension_numbers = #tpu.dot_dimension_numbers<[1], [0], [0], [1], [0, 0, 1, 1], [], []>} : vector<16x32xf32>, vector<32x8xf32>, vector<16x8xf32> -> vector<16x8xf32>
    %c10_90 = arith.constant 10 : index
    %c0_91 = arith.constant 0 : index
    %c0_92 = arith.constant 0 : index
    %163 = vector.load %arg2[%c10_90, %c0_91, %c0_92] : memref<12x1x8xf32, #tpu.memory_space<vmem>>, vector<1x1x8xf32>
    %164 = vector.shape_cast %163 : vector<1x1x8xf32> to vector<1x8xf32>
    %165 = vector.broadcast %164 : vector<1x8xf32> to vector<16x8xf32>
    %166 = arith.addf %162, %165 : vector<16x8xf32>
    %167 = vector.extract_strided_slice %152 {offsets = [0, 0], sizes = [8, 8], strides = [1, 1]} : vector<16x8xf32> to vector<8x8xf32>
    %168 = vector.extract_strided_slice %159 {offsets = [0, 0], sizes = [8, 8], strides = [1, 1]} : vector<16x8xf32> to vector<8x8xf32>
    %169 = vector.extract_strided_slice %166 {offsets = [0, 0], sizes = [8, 8], strides = [1, 1]} : vector<16x8xf32> to vector<8x8xf32>
    %cst_93 = arith.constant dense<0.000000e+00> : vector<8x8xf32>
    %170 = tpu.matmul %167, %168, %cst_93 {dimension_numbers = #tpu.dot_dimension_numbers<[1], [1], [0], [0], [0, 0, 1, 0], [], []>} : vector<8x8xf32>, vector<8x8xf32>, vector<8x8xf32> -> vector<8x8xf32>
    %cst_94 = arith.constant 0.353553385 : f32
    %171 = vector.broadcast %cst_94 : f32 to vector<8x8xf32>
    %172 = arith.mulf %170, %171 : vector<8x8xf32>
    %cst_95 = arith.constant dense<0xFF800000> : vector<8xf32>
    %173 = vector.multi_reduction <maximumf>, %172, %cst_95 [1] : vector<8x8xf32> to vector<8xf32>
    %174 = vector.shape_cast %173 : vector<8xf32> to vector<8x1xf32>
    %175 = vector.broadcast %174 : vector<8x1xf32> to vector<8x8xf32>
    %176 = arith.subf %172, %175 : vector<8x8xf32>
    %177 = math.exp %176 : vector<8x8xf32>
    %cst_96 = arith.constant dense<0.000000e+00> : vector<8xf32>
    %178 = vector.multi_reduction <add>, %177, %cst_96 [1] : vector<8x8xf32> to vector<8xf32>
    %179 = vector.shape_cast %178 : vector<8xf32> to vector<8x1xf32>
    %180 = tpu.reciprocal %179 {approx = true} : vector<8x1xf32> -> vector<8x1xf32>
    %181 = vector.broadcast %180 : vector<8x1xf32> to vector<8x8xf32>
    %182 = arith.mulf %177, %181 : vector<8x8xf32>
    %cst_97 = arith.constant dense<0.000000e+00> : vector<8x8xf32>
    %183 = tpu.matmul %182, %169, %cst_97 {dimension_numbers = #tpu.dot_dimension_numbers<[1], [0], [0], [1], [0, 0, 1, 1], [], []>} : vector<8x8xf32>, vector<8x8xf32>, vector<8x8xf32> -> vector<8x8xf32>
    %184 = vector.extract_strided_slice %152 {offsets = [8, 0], sizes = [8, 8], strides = [1, 1]} : vector<16x8xf32> to vector<8x8xf32>
    %185 = vector.extract_strided_slice %159 {offsets = [8, 0], sizes = [8, 8], strides = [1, 1]} : vector<16x8xf32> to vector<8x8xf32>
    %186 = vector.extract_strided_slice %166 {offsets = [8, 0], sizes = [8, 8], strides = [1, 1]} : vector<16x8xf32> to vector<8x8xf32>
    %cst_98 = arith.constant dense<0.000000e+00> : vector<8x8xf32>
    %187 = tpu.matmul %184, %185, %cst_98 {dimension_numbers = #tpu.dot_dimension_numbers<[1], [1], [0], [0], [0, 0, 1, 0], [], []>} : vector<8x8xf32>, vector<8x8xf32>, vector<8x8xf32> -> vector<8x8xf32>
    %cst_99 = arith.constant 0.353553385 : f32
    %188 = vector.broadcast %cst_99 : f32 to vector<8x8xf32>
    %189 = arith.mulf %187, %188 : vector<8x8xf32>
    %cst_100 = arith.constant dense<0xFF800000> : vector<8xf32>
    %190 = vector.multi_reduction <maximumf>, %189, %cst_100 [1] : vector<8x8xf32> to vector<8xf32>
    %191 = vector.shape_cast %190 : vector<8xf32> to vector<8x1xf32>
    %192 = vector.broadcast %191 : vector<8x1xf32> to vector<8x8xf32>
    %193 = arith.subf %189, %192 : vector<8x8xf32>
    %194 = math.exp %193 : vector<8x8xf32>
    %cst_101 = arith.constant dense<0.000000e+00> : vector<8xf32>
    %195 = vector.multi_reduction <add>, %194, %cst_101 [1] : vector<8x8xf32> to vector<8xf32>
    %196 = vector.shape_cast %195 : vector<8xf32> to vector<8x1xf32>
    %197 = tpu.reciprocal %196 {approx = true} : vector<8x1xf32> -> vector<8x1xf32>
    %198 = vector.broadcast %197 : vector<8x1xf32> to vector<8x8xf32>
    %199 = arith.mulf %194, %198 : vector<8x8xf32>
    %cst_102 = arith.constant dense<0.000000e+00> : vector<8x8xf32>
    %200 = tpu.matmul %199, %186, %cst_102 {dimension_numbers = #tpu.dot_dimension_numbers<[1], [0], [0], [1], [0, 0, 1, 1], [], []>} : vector<8x8xf32>, vector<8x8xf32>, vector<8x8xf32> -> vector<8x8xf32>
    %201 = tpu.concatenate %183, %200 in 0 : vector<8x8xf32>, vector<8x8xf32> -> vector<16x8xf32>
    %c2_103 = arith.constant 2 : index
    %c0_104 = arith.constant 0 : index
    %c0_105 = arith.constant 0 : index
    %202 = vector.load %arg3[%c2_103, %c0_104, %c0_105] : memref<4x8x32xf32, #tpu.memory_space<vmem>>, vector<1x8x32xf32>
    %203 = vector.shape_cast %202 : vector<1x8x32xf32> to vector<8x32xf32>
    %cst_106 = arith.constant dense<0.000000e+00> : vector<16x32xf32>
    %204 = tpu.matmul %201, %203, %cst_106 {dimension_numbers = #tpu.dot_dimension_numbers<[1], [0], [0], [1], [0, 0, 1, 1], [], []>} : vector<16x8xf32>, vector<8x32xf32>, vector<16x32xf32> -> vector<16x32xf32>
    %205 = arith.addf %145, %204 : vector<16x32xf32>
    %c3 = arith.constant 3 : index
    %c0_107 = arith.constant 0 : index
    %c0_108 = arith.constant 0 : index
    %206 = vector.load %arg1[%c3, %c0_107, %c0_108] : memref<12x32x8xf32, #tpu.memory_space<vmem>>, vector<1x32x8xf32>
    %207 = vector.shape_cast %206 : vector<1x32x8xf32> to vector<32x8xf32>
    %cst_109 = arith.constant dense<0.000000e+00> : vector<16x8xf32>
    %208 = tpu.matmul %24, %207, %cst_109 {dimension_numbers = #tpu.dot_dimension_numbers<[1], [0], [0], [1], [0, 0, 1, 1], [], []>} : vector<16x32xf32>, vector<32x8xf32>, vector<16x8xf32> -> vector<16x8xf32>
    %c3_110 = arith.constant 3 : index
    %c0_111 = arith.constant 0 : index
    %c0_112 = arith.constant 0 : index
    %209 = vector.load %arg2[%c3_110, %c0_111, %c0_112] : memref<12x1x8xf32, #tpu.memory_space<vmem>>, vector<1x1x8xf32>
    %210 = vector.shape_cast %209 : vector<1x1x8xf32> to vector<1x8xf32>
    %211 = vector.broadcast %210 : vector<1x8xf32> to vector<16x8xf32>
    %212 = arith.addf %208, %211 : vector<16x8xf32>
    %c7 = arith.constant 7 : index
    %c0_113 = arith.constant 0 : index
    %c0_114 = arith.constant 0 : index
    %213 = vector.load %arg1[%c7, %c0_113, %c0_114] : memref<12x32x8xf32, #tpu.memory_space<vmem>>, vector<1x32x8xf32>
    %214 = vector.shape_cast %213 : vector<1x32x8xf32> to vector<32x8xf32>
    %cst_115 = arith.constant dense<0.000000e+00> : vector<16x8xf32>
    %215 = tpu.matmul %24, %214, %cst_115 {dimension_numbers = #tpu.dot_dimension_numbers<[1], [0], [0], [1], [0, 0, 1, 1], [], []>} : vector<16x32xf32>, vector<32x8xf32>, vector<16x8xf32> -> vector<16x8xf32>
    %c7_116 = arith.constant 7 : index
    %c0_117 = arith.constant 0 : index
    %c0_118 = arith.constant 0 : index
    %216 = vector.load %arg2[%c7_116, %c0_117, %c0_118] : memref<12x1x8xf32, #tpu.memory_space<vmem>>, vector<1x1x8xf32>
    %217 = vector.shape_cast %216 : vector<1x1x8xf32> to vector<1x8xf32>
    %218 = vector.broadcast %217 : vector<1x8xf32> to vector<16x8xf32>
    %219 = arith.addf %215, %218 : vector<16x8xf32>
    %c11 = arith.constant 11 : index
    %c0_119 = arith.constant 0 : index
    %c0_120 = arith.constant 0 : index
    %220 = vector.load %arg1[%c11, %c0_119, %c0_120] : memref<12x32x8xf32, #tpu.memory_space<vmem>>, vector<1x32x8xf32>
    %221 = vector.shape_cast %220 : vector<1x32x8xf32> to vector<32x8xf32>
    %cst_121 = arith.constant dense<0.000000e+00> : vector<16x8xf32>
    %222 = tpu.matmul %24, %221, %cst_121 {dimension_numbers = #tpu.dot_dimension_numbers<[1], [0], [0], [1], [0, 0, 1, 1], [], []>} : vector<16x32xf32>, vector<32x8xf32>, vector<16x8xf32> -> vector<16x8xf32>
    %c11_122 = arith.constant 11 : index
    %c0_123 = arith.constant 0 : index
    %c0_124 = arith.constant 0 : index
    %223 = vector.load %arg2[%c11_122, %c0_123, %c0_124] : memref<12x1x8xf32, #tpu.memory_space<vmem>>, vector<1x1x8xf32>
    %224 = vector.shape_cast %223 : vector<1x1x8xf32> to vector<1x8xf32>
    %225 = vector.broadcast %224 : vector<1x8xf32> to vector<16x8xf32>
    %226 = arith.addf %222, %225 : vector<16x8xf32>
    %227 = vector.extract_strided_slice %212 {offsets = [0, 0], sizes = [8, 8], strides = [1, 1]} : vector<16x8xf32> to vector<8x8xf32>
    %228 = vector.extract_strided_slice %219 {offsets = [0, 0], sizes = [8, 8], strides = [1, 1]} : vector<16x8xf32> to vector<8x8xf32>
    %229 = vector.extract_strided_slice %226 {offsets = [0, 0], sizes = [8, 8], strides = [1, 1]} : vector<16x8xf32> to vector<8x8xf32>
    %cst_125 = arith.constant dense<0.000000e+00> : vector<8x8xf32>
    %230 = tpu.matmul %227, %228, %cst_125 {dimension_numbers = #tpu.dot_dimension_numbers<[1], [1], [0], [0], [0, 0, 1, 0], [], []>} : vector<8x8xf32>, vector<8x8xf32>, vector<8x8xf32> -> vector<8x8xf32>
    %cst_126 = arith.constant 0.353553385 : f32
    %231 = vector.broadcast %cst_126 : f32 to vector<8x8xf32>
    %232 = arith.mulf %230, %231 : vector<8x8xf32>
    %cst_127 = arith.constant dense<0xFF800000> : vector<8xf32>
    %233 = vector.multi_reduction <maximumf>, %232, %cst_127 [1] : vector<8x8xf32> to vector<8xf32>
    %234 = vector.shape_cast %233 : vector<8xf32> to vector<8x1xf32>
    %235 = vector.broadcast %234 : vector<8x1xf32> to vector<8x8xf32>
    %236 = arith.subf %232, %235 : vector<8x8xf32>
    %237 = math.exp %236 : vector<8x8xf32>
    %cst_128 = arith.constant dense<0.000000e+00> : vector<8xf32>
    %238 = vector.multi_reduction <add>, %237, %cst_128 [1] : vector<8x8xf32> to vector<8xf32>
    %239 = vector.shape_cast %238 : vector<8xf32> to vector<8x1xf32>
    %240 = tpu.reciprocal %239 {approx = true} : vector<8x1xf32> -> vector<8x1xf32>
    %241 = vector.broadcast %240 : vector<8x1xf32> to vector<8x8xf32>
    %242 = arith.mulf %237, %241 : vector<8x8xf32>
    %cst_129 = arith.constant dense<0.000000e+00> : vector<8x8xf32>
    %243 = tpu.matmul %242, %229, %cst_129 {dimension_numbers = #tpu.dot_dimension_numbers<[1], [0], [0], [1], [0, 0, 1, 1], [], []>} : vector<8x8xf32>, vector<8x8xf32>, vector<8x8xf32> -> vector<8x8xf32>
    %244 = vector.extract_strided_slice %212 {offsets = [8, 0], sizes = [8, 8], strides = [1, 1]} : vector<16x8xf32> to vector<8x8xf32>
    %245 = vector.extract_strided_slice %219 {offsets = [8, 0], sizes = [8, 8], strides = [1, 1]} : vector<16x8xf32> to vector<8x8xf32>
    %246 = vector.extract_strided_slice %226 {offsets = [8, 0], sizes = [8, 8], strides = [1, 1]} : vector<16x8xf32> to vector<8x8xf32>
    %cst_130 = arith.constant dense<0.000000e+00> : vector<8x8xf32>
    %247 = tpu.matmul %244, %245, %cst_130 {dimension_numbers = #tpu.dot_dimension_numbers<[1], [1], [0], [0], [0, 0, 1, 0], [], []>} : vector<8x8xf32>, vector<8x8xf32>, vector<8x8xf32> -> vector<8x8xf32>
    %cst_131 = arith.constant 0.353553385 : f32
    %248 = vector.broadcast %cst_131 : f32 to vector<8x8xf32>
    %249 = arith.mulf %247, %248 : vector<8x8xf32>
    %cst_132 = arith.constant dense<0xFF800000> : vector<8xf32>
    %250 = vector.multi_reduction <maximumf>, %249, %cst_132 [1] : vector<8x8xf32> to vector<8xf32>
    %251 = vector.shape_cast %250 : vector<8xf32> to vector<8x1xf32>
    %252 = vector.broadcast %251 : vector<8x1xf32> to vector<8x8xf32>
    %253 = arith.subf %249, %252 : vector<8x8xf32>
    %254 = math.exp %253 : vector<8x8xf32>
    %cst_133 = arith.constant dense<0.000000e+00> : vector<8xf32>
    %255 = vector.multi_reduction <add>, %254, %cst_133 [1] : vector<8x8xf32> to vector<8xf32>
    %256 = vector.shape_cast %255 : vector<8xf32> to vector<8x1xf32>
    %257 = tpu.reciprocal %256 {approx = true} : vector<8x1xf32> -> vector<8x1xf32>
    %258 = vector.broadcast %257 : vector<8x1xf32> to vector<8x8xf32>
    %259 = arith.mulf %254, %258 : vector<8x8xf32>
    %cst_134 = arith.constant dense<0.000000e+00> : vector<8x8xf32>
    %260 = tpu.matmul %259, %246, %cst_134 {dimension_numbers = #tpu.dot_dimension_numbers<[1], [0], [0], [1], [0, 0, 1, 1], [], []>} : vector<8x8xf32>, vector<8x8xf32>, vector<8x8xf32> -> vector<8x8xf32>
    %261 = tpu.concatenate %243, %260 in 0 : vector<8x8xf32>, vector<8x8xf32> -> vector<16x8xf32>
    %c3_135 = arith.constant 3 : index
    %c0_136 = arith.constant 0 : index
    %c0_137 = arith.constant 0 : index
    %262 = vector.load %arg3[%c3_135, %c0_136, %c0_137] : memref<4x8x32xf32, #tpu.memory_space<vmem>>, vector<1x8x32xf32>
    %263 = vector.shape_cast %262 : vector<1x8x32xf32> to vector<8x32xf32>
    %cst_138 = arith.constant dense<0.000000e+00> : vector<16x32xf32>
    %264 = tpu.matmul %261, %263, %cst_138 {dimension_numbers = #tpu.dot_dimension_numbers<[1], [0], [0], [1], [0, 0, 1, 1], [], []>} : vector<16x8xf32>, vector<8x32xf32>, vector<16x32xf32> -> vector<16x32xf32>
    %265 = arith.addf %205, %264 : vector<16x32xf32>
    %c0_139 = arith.constant 0 : index
    %c0_140 = arith.constant 0 : index
    %266 = vector.load %arg4[%c0_139, %c0_140] : memref<1x32xf32, #tpu.memory_space<vmem>>, vector<1x32xf32>
    %267 = vector.broadcast %266 : vector<1x32xf32> to vector<16x32xf32>
    %268 = arith.addf %265, %267 : vector<16x32xf32>
    %269 = arith.addf %268, %24 : vector<16x32xf32>
    %c0_141 = arith.constant 0 : index
    %c0_142 = arith.constant 0 : index
    %270 = vector.load %arg7[%c0_141, %c0_142] : memref<1x32xf32, #tpu.memory_space<vmem>>, vector<1x32xf32>
    %c0_143 = arith.constant 0 : index
    %c0_144 = arith.constant 0 : index
    %271 = vector.load %arg8[%c0_143, %c0_144] : memref<1x32xf32, #tpu.memory_space<vmem>>, vector<1x32xf32>
    %cst_145 = arith.constant dense<0.000000e+00> : vector<16xf32>
    %272 = vector.multi_reduction <add>, %269, %cst_145 [1] : vector<16x32xf32> to vector<16xf32>
    %273 = vector.shape_cast %272 : vector<16xf32> to vector<16x1xf32>
    %cst_146 = arith.constant 3.200000e+01 : f32
    %274 = vector.broadcast %cst_146 : f32 to vector<16x1xf32>
    %275 = arith.divf %273, %274 : vector<16x1xf32>
    %276 = vector.broadcast %275 : vector<16x1xf32> to vector<16x32xf32>
    %277 = arith.subf %269, %276 : vector<16x32xf32>
    %278 = arith.mulf %277, %277 : vector<16x32xf32>
    %cst_147 = arith.constant dense<0.000000e+00> : vector<16xf32>
    %279 = vector.multi_reduction <add>, %278, %cst_147 [1] : vector<16x32xf32> to vector<16xf32>
    %280 = vector.shape_cast %279 : vector<16xf32> to vector<16x1xf32>
    %cst_148 = arith.constant 3.200000e+01 : f32
    %281 = vector.broadcast %cst_148 : f32 to vector<16x1xf32>
    %282 = arith.divf %280, %281 : vector<16x1xf32>
    %283 = vector.broadcast %275 : vector<16x1xf32> to vector<16x32xf32>
    %284 = arith.subf %269, %283 : vector<16x32xf32>
    %cst_149 = arith.constant 9.99999997E-7 : f32
    %285 = vector.broadcast %cst_149 : f32 to vector<16x1xf32>
    %286 = arith.addf %282, %285 : vector<16x1xf32>
    %287 = math.rsqrt %286 : vector<16x1xf32>
    %288 = vector.broadcast %287 : vector<16x1xf32> to vector<16x32xf32>
    %289 = arith.mulf %284, %288 : vector<16x32xf32>
    %290 = vector.broadcast %270 : vector<1x32xf32> to vector<16x32xf32>
    %291 = arith.mulf %289, %290 : vector<16x32xf32>
    %292 = vector.broadcast %271 : vector<1x32xf32> to vector<16x32xf32>
    %293 = arith.addf %291, %292 : vector<16x32xf32>
    %c0_150 = arith.constant 0 : index
    %c0_151 = arith.constant 0 : index
    %294 = vector.load %arg9[%c0_150, %c0_151] : memref<32x64xf32, #tpu.memory_space<vmem>>, vector<32x64xf32>
    %cst_152 = arith.constant dense<0.000000e+00> : vector<16x64xf32>
    %295 = tpu.matmul %269, %294, %cst_152 {dimension_numbers = #tpu.dot_dimension_numbers<[1], [0], [0], [1], [0, 0, 1, 1], [], []>} : vector<16x32xf32>, vector<32x64xf32>, vector<16x64xf32> -> vector<16x64xf32>
    %c0_153 = arith.constant 0 : index
    %c0_154 = arith.constant 0 : index
    %296 = vector.load %arg10[%c0_153, %c0_154] : memref<1x64xf32, #tpu.memory_space<vmem>>, vector<1x64xf32>
    %297 = vector.broadcast %296 : vector<1x64xf32> to vector<16x64xf32>
    %298 = arith.addf %295, %297 : vector<16x64xf32>
    %cst_155 = arith.constant 5.000000e-01 : f32
    %299 = vector.broadcast %cst_155 : f32 to vector<16x64xf32>
    %300 = arith.mulf %299, %298 : vector<16x64xf32>
    %cst_156 = arith.constant 4.471500e-02 : f32
    %301 = vector.broadcast %cst_156 : f32 to vector<16x64xf32>
    %302 = arith.mulf %301, %298 : vector<16x64xf32>
    %303 = arith.mulf %302, %298 : vector<16x64xf32>
    %304 = arith.mulf %303, %298 : vector<16x64xf32>
    %305 = arith.addf %298, %304 : vector<16x64xf32>
    %cst_157 = arith.constant 0.797884583 : f32
    %306 = vector.broadcast %cst_157 : f32 to vector<16x64xf32>
    %307 = arith.mulf %306, %305 : vector<16x64xf32>
    %308 = math.tanh %307 : vector<16x64xf32>
    %cst_158 = arith.constant 1.000000e+00 : f32
    %309 = vector.broadcast %cst_158 : f32 to vector<16x64xf32>
    %310 = arith.addf %309, %308 : vector<16x64xf32>
    %311 = arith.mulf %300, %310 : vector<16x64xf32>
    %c0_159 = arith.constant 0 : index
    %c0_160 = arith.constant 0 : index
    %312 = vector.load %arg11[%c0_159, %c0_160] : memref<64x32xf32, #tpu.memory_space<vmem>>, vector<64x32xf32>
    %cst_161 = arith.constant dense<0.000000e+00> : vector<16x32xf32>
    %313 = tpu.matmul %311, %312, %cst_161 {dimension_numbers = #tpu.dot_dimension_numbers<[1], [0], [0], [1], [0, 0, 1, 1], [], []>} : vector<16x64xf32>, vector<64x32xf32>, vector<16x32xf32> -> vector<16x32xf32>
    %c0_162 = arith.constant 0 : index
    %c0_163 = arith.constant 0 : index
    %314 = vector.load %arg12[%c0_162, %c0_163] : memref<1x32xf32, #tpu.memory_space<vmem>>, vector<1x32xf32>
    %315 = vector.broadcast %314 : vector<1x32xf32> to vector<16x32xf32>
    %316 = arith.addf %313, %315 : vector<16x32xf32>
    %317 = arith.addf %316, %293 : vector<16x32xf32>
    %c0_164 = arith.constant 0 : index
    %c0_165 = arith.constant 0 : index
    %318 = vector.load %arg13[%c0_164, %c0_165] : memref<16x32xf32, #tpu.memory_space<vmem>>, vector<16x32xf32>
    tpu.vector_store %arg13[%c0_164, %c0_165], %317 {strides = array<i32>} : memref<16x32xf32, #tpu.memory_space<vmem>>, vector<16x32xf32>,
    return
  }
}

</mosaic_0001>

<bundles_post_ra>
// kernel: siglip_encoder_layer.1
= control target key start
LH: loop header
LB: loop body
LE: loop exit
PB: predicated region body
PF: predicated region fallthrough
CT: control target
= control target key end

     0   :  { %vm49_vm0 = vcmask 261120   ;;  %s2038_s0 = inlined_call_operand.vmem [shape: f32[16,32], index: 0, kind: input, shape index: {}]   ;;  %s2039_s1 = inlined_call_operand.vmem [shape: f32[12,32,8], index: 1, kind: input, shape index: {}]   ;;  %s2040_s2 = inlined_call_operand.vmem [shape: f32[12,1,8], index: 2, kind: input, shape index: {}]   ;;  %s2041_s3 = inlined_call_operand.vmem [shape: f32[4,8,32], index: 3, kind: input, shape index: {}]   ;;  %s2042_s4 = inlined_call_operand.vmem [shape: f32[1,32], index: 4, kind: input, shape index: {}]   ;;  %s2043_s5 = inlined_call_operand.vmem [shape: f32[1,32], index: 5, kind: input, shape index: {}]   ;;  %s2044_s6 = inlined_call_operand.vmem [shape: f32[1,32], index: 6, kind: input, shape index: {}]   ;;  %s2045_s7 = inlined_call_operand.vmem [shape: f32[1,32], index: 7, kind: input, shape index: {}]   ;;  %s2046_s8 = inlined_call_operand.vmem [shape: f32[1,32], index: 8, kind: input, shape index: {}]   ;;  %s2047_s9 = inlined_call_operand.vmem [shape: f32[32,64], index: 9, kind: input, shape index: {}]   ;;  %s2048_s10 = inlined_call_operand.vmem [shape: f32[1,64], index: 10, kind: input, shape index: {}]   ;;  %s2049_s11 = inlined_call_operand.vmem [shape: f32[64,32], index: 11, kind: input, shape index: {}]   ;;  %s2050_s12 = inlined_call_operand.vmem [shape: f32[1,32], index: 12, kind: input, shape index: {}]   ;;  %s2051_s13 = inlined_call_operand.hbm [shape: f32[16,32], index: 13, kind: output, shape index: {}]  }
   0x1   :  { %v45_v0 = vld [vmem:[%s2038_s0] sm:$0xff]  ;;  %v46_v1 = vld [vmem:[%s2038_s0 + $0x8] sm:$0xff] }
   0x2   :  { %v50_v2 = vsel %vm49_vm0, %v45_v0, 0.0  ;;  %v53_v3 = vsel %vm49_vm0, %v46_v1, 0.0 }
   0x3   :  { %51 = vadd.xlane.f32.xlu0 %v50_v2  ;;  %54 = vadd.xlane.f32.xlu1 %v53_v3 }
   0x4   :  { %18 = vsyncpa [#allocation3], 0  ;;  %v1523_v4 = vmov 32.0   ;;  %v114_v21 = vld [vmem:[%s2039_s1 + $0x18] sm:$0xff]  ;;  %v113_v24 = vld [vmem:[%s2039_s1 + $0x10] sm:$0xff]  ;;  %vm214_vm8 = vcmask 64512  }
   0x5   :  { %1451 = vrcp.f32 %v1523_v4  ;;  %v1315_v22 = vld [vmem:[%s2039_s1 + $0x98] sm:$0xff]  ;;  %137 = vmatpush.msra.mxu0 %v114_v21  ;;  %v1314_v25 = vld [vmem:[%s2039_s1 + $0x90] sm:$0xff]  ;;  %v112_v27 = vld [vmem:[%s2039_s1 + $0x8] sm:$0xff]  ;;  %vm1258_vm9 = vcmask 523264  }
   0x6   :  { %v1322_v23 = vld [vmem:[%s2039_s1 + $0x118] sm:$0xff]  ;;  %170 = vmatpush.msra.mxu1 %v1315_v22  ;;  %v1321_v26 = vld [vmem:[%s2039_s1 + $0x110] sm:$0xff]  ;;  %v1313_v28 = vld [vmem:[%s2039_s1 + $0x88] sm:$0xff] }
   0x7   :  { %203 = vmatpush.msra.mxu2 %v1322_v23  ;;  %138 = vmatpush.msra.mxu0 %v113_v24  ;;  %v1320_v29 = vld [vmem:[%s2039_s1 + $0x108] sm:$0xff]  ;;  %v111_v30 = vld [vmem:[%s2039_s1] sm:$0xff]  ;;  %v1335_v39 = vld [vmem:[%s2039_s1 + $0x38] sm:$0xff] }
   0x8   :  { %171 = vmatpush.msra.mxu1 %v1314_v25  ;;  %v1312_v31 = vld [vmem:[%s2039_s1 + $0x80] sm:$0xff]  ;;  %v1342_v40 = vld [vmem:[%s2039_s1 + $0xb8] sm:$0xff]  ;;  %v1334_v41 = vld [vmem:[%s2039_s1 + $0x30] sm:$0xff] }
   0x9   :  { %204 = vmatpush.msra.mxu2 %v1321_v26  ;;  %139 = vmatpush.msra.mxu0 %v112_v27  ;;  %v1319_v32 = vld [vmem:[%s2039_s1 + $0x100] sm:$0xff]  ;;  %v1341_v42 = vld [vmem:[%s2039_s1 + $0xb0] sm:$0xff]  ;;  %v1333_v43 = vld [vmem:[%s2039_s1 + $0x28] sm:$0xff] }
   0xa   :  { %172 = vmatpush.msra.mxu1 %v1313_v28  ;;  %v1340_v44 = vld [vmem:[%s2039_s1 + $0xa8] sm:$0xff]  ;;  %v1332_v45 = vld [vmem:[%s2039_s1 + $0x20] sm:$0xff]  ;;  %v1367_v28 = vld [vmem:[%s2039_s1 + $0x58] sm:$0xff] }
   0xb   :  { %v1452_v5 = vpop.eup %1451  ;;  %205 = vmatpush.msra.mxu2 %v1320_v29  ;;  %140 = vmatpush.msra.mxu0 %v111_v30  ;;  %v1339_v46 = vld [vmem:[%s2039_s1 + $0xa0] sm:$0xff]  ;;  %v1366_v30 = vld [vmem:[%s2039_s1 + $0x50] sm:$0xff] }
   0xc   :  { %v57_v6 = vmul.f32 32.0, %v1452_v5  ;;  %vm61_vm1 = vweird.f32 %v1452_v5  ;;  %173 = vmatpush.msra.mxu1 %v1312_v31  ;;  %v1432_v58 = vld [vmem:[%s2043_s5] ss:$0 sm:$0xff]  ;;  %v1438_v22 = vld [vmem:[%s2040_s2 + $0x5] ss:$0 sm:$0xff]  ;;  %v1365_v31 = vld [vmem:[%s2039_s1 + $0x48] sm:$0xff] }
   0xd   :  { %206 = vmatpush.msra.mxu2 %v1319_v32  ;;  %v1433_v61 = vld [vmem:[%s2044_s6] ss:$0 sm:$0xff] }
   0xe   :  { %v58_v7 = vsub.f32 1.0, %v57_v6  ;;  %360 = vmatpush.msrb.mxu1 %v1335_v39  ;;  %v1719_v6 = vld [vmem:[%s2040_s2] ss:$0 sm:$0xff] }
   0xf   :  { %393 = vmatpush.msrb.mxu2 %v1342_v40  ;;  %v1364_v32 = vld [vmem:[%s2039_s1 + $0x40] sm:$0xff] }
  0x10   :  { %v59_v8 = vmul.f32 %v1452_v5, %v58_v7  ;;  %361 = vmatpush.msrb.mxu1 %v1334_v41 }
  0x11   :  { %394 = vmatpush.msrb.mxu2 %v1341_v42 }
  0x12   :  { %v60_v9 = vadd.f32 %v1452_v5, %v59_v8  ;;  %362 = vmatpush.msrb.mxu1 %v1333_v43 }
  0x13   :  { %395 = vmatpush.msrb.mxu2 %v1340_v44 }
  0x14   :  { %v1605_v10 = vsel %vm61_vm1, %v1452_v5, %v60_v9  ;;  %363 = vmatpush.msrb.mxu1 %v1332_v45  ;;  %v1435_v5 = vld [vmem:[%s2040_s2 + $0x4] ss:$0 sm:$0xff] }
  0x15   :  { %396 = vmatpush.msrb.mxu2 %v1339_v46 }
  0x76   :  { %v52_v11 = vpop.xlane.xlu0 %51  ;;  %v55_v12 = vpop.xlane.xlu1 %54 }
  0x77   :  { %v63_v13 = vmul.f32 %v1605_v10, %v52_v11  ;;  %v64_v14 = vmul.f32 %v1605_v10, %v55_v12  ;;  %v1436_v12 = vld [vmem:[%s2040_s2 + $0x8] ss:$0 sm:$0xff] }
  0x79   :  { %v1609_v15 = vsub.f32 %v45_v0, %v63_v13  ;;  %v1611_v16 = vsub.f32 %v46_v1, %v64_v14 }
  0x7b   :  { %v67_v17 = vmul.f32 %v1609_v15, %v1609_v15  ;;  %v68_v18 = vmul.f32 %v1611_v16, %v1611_v16 }
  0x7d   :  { %v69_v19 = vsel %vm49_vm0, %v67_v17, 0.0  ;;  %v72_v20 = vsel %vm49_vm0, %v68_v18, 0.0  ;;  %v1437_v17 = vld [vmem:[%s2040_s2 + $0x1] ss:$0 sm:$0xff] }
  0x7e   :  { %70 = vadd.xlane.f32.xlu0 %v69_v19  ;;  %73 = vadd.xlane.f32.xlu1 %v72_v20 }
  0xf1   :  { %v71_v33 = vpop.xlane.xlu0 %70  ;;  %v74_v34 = vpop.xlane.xlu1 %73 }
  0xf2   :  { %v75_v35 = vmul.f32 %v71_v33, %v1605_v10  ;;  %v76_v36 = vmul.f32 %v74_v34, %v1605_v10 }
  0xf4   :  { %v77_v37 = vadd.f32 1e-06, %v75_v35  ;;  %v78_v38 = vadd.f32 1e-06, %v76_v36 }
  0xf6   :  { %1453 = vrsqrt.f32 %v77_v37  ;;  %vm95_vm2 = vweird.f32 %v78_v38  ;;  %vm85_vm5 = vweird.f32 %v77_v37 }
  0xf7   :  { %1455 = vrsqrt.f32 %v78_v38 }
  0xfc   :  { %v1454_v47 = vpop.eup %1453 }
  0xfd   :  { %v1456_v48 = vpop.eup %1455  ;;  %v80_v49 = vmul.f32 %v1454_v47, %v77_v37  ;;  %vm86_vm4 = vweird.f32 %v1454_v47  ;;  %v1759_v37 = vld [vmem:[%s2040_s2 + $0x2] ss:$0 sm:$0xff] }
  0xfe   :  { %v90_v50 = vmul.f32 %v1456_v48, %v78_v38  ;;  %vm96_vm3 = vweird.f32 %v1456_v48  ;;  %vm87_vm7 = vmor %vm85_vm5, %vm86_vm4 }
  0xff   :  { %v81_v51 = vmul.f32 %v1454_v47, %v80_v49  ;;  %vm97_vm6 = vmor %vm95_vm2, %vm96_vm3 }
 0x100   :  { %v91_v52 = vmul.f32 %v1456_v48, %v90_v50  ;;  %v1349_v50 = vld [vmem:[%s2039_s1 + $0x138] sm:$0xff] }
 0x101   :  { %v82_v53 = vmul.f32 0.5, %v81_v51  ;;  %v1348_v51 = vld [vmem:[%s2039_s1 + $0x130] sm:$0xff] }
 0x102   :  { %v92_v54 = vmul.f32 0.5, %v91_v52  ;;  %v1347_v52 = vld [vmem:[%s2039_s1 + $0x128] sm:$0xff] }
 0x103   :  { %v83_v55 = vsub.f32 1.5, %v82_v53 }
 0x104   :  { %v93_v56 = vsub.f32 1.5, %v92_v54  ;;  %v1346_v54 = vld [vmem:[%s2039_s1 + $0x120] sm:$0xff] }
 0x105   :  { %v84_v57 = vmul.f32 %v1454_v47, %v83_v55 }
 0x106   :  { %v94_v59 = vmul.f32 %v1456_v48, %v93_v56 }
 0x107   :  { %v88_v60 = vsel %vm87_vm7, %v1454_v47, %v84_v57 }
 0x108   :  { %v99_v62 = vmul.f32 %v88_v60, %v1609_v15  ;;  %v98_v63 = vsel %vm97_vm6, %v1456_v48, %v94_v59 }
 0x109   :  { %v100_v1 = vmul.f32 %v98_v63, %v1611_v16  ;;  %v1440_v63 = vld [vmem:[%s2040_s2 + $0x9] ss:$0 sm:$0xff] }
 0x10a   :  { %v104_v0 = vmul.f32 %v1432_v58, %v99_v62 }
 0x10b   :  { %v105_v3 = vmul.f32 %v1432_v58, %v100_v1 }
 0x10c   :  { %v1689_v2 = vadd.f32 %v1433_v61, %v104_v0 }
 0x10d   :  { %v1697_v4 = vadd.f32 %v1433_v61, %v105_v3 }
 0x10e   :  { %1310 = vmatmul.msk.f32.vlgmr.msra.gmra.mxu0 %vm49_vm0, %v1689_v2  ;;  %1317 = vmatmul.msk.f32.vlgmr.msra.gmra.mxu1 %vm49_vm0, %v1689_v2 }
 0x10f   :  { %1324 = vmatmul.msk.f32.vlgmr.msra.gmra.mxu2 %vm49_vm0, %v1689_v2 }
 0x116   :  { %1318 = vmatmul.msk.f32.gmra.mxu1 %vm49_vm0, %v1697_v4  ;;  %1311 = vmatmul.msk.f32.gmra.mxu0 %vm49_vm0, %v1697_v4 }
 0x117   :  { %1325 = vmatmul.msk.f32.gmra.mxu2 %vm49_vm0, %v1697_v4 }
 0x11e   :  { %1337 = vmatmul.msk.f32.vlgmr.msrb.gmra.mxu1 %vm49_vm0, %v1689_v2 }
 0x11f   :  { %1344 = vmatmul.msk.f32.vlgmr.msrb.gmra.mxu2 %vm49_vm0, %v1689_v2 }
 0x126   :  { %1338 = vmatmul.msk.f32.gmra.mxu1 %vm49_vm0, %v1697_v4 }
 0x127   :  { %1345 = vmatmul.msk.f32.gmra.mxu2 %vm49_vm0, %v1697_v4 }
 0x18b   :  { %v175_v7 = vpop.f32.mrf.mxu1  ;;  %v142_v8 = vpop.f32.mrf.mxu0 }
 0x18c   :  { %v176_v9 = vadd.f32 %v1435_v5, %v175_v7  ;;  %v143_v11 = vadd.f32 %v1719_v6, %v142_v8  ;;  %v1374_v8 = vld [vmem:[%s2039_s1 + $0xd8] sm:$0xff] }
 0x18e   :  { %1326 = vmatpush.xpose.msk.msra.mxu3 %vm214_vm8, %v176_v9  ;;  %v1373_v9 = vld [vmem:[%s2039_s1 + $0xd0] sm:$0xff] }
 0x191   :  { %1327 = vmatmul.msk.f32.vlgmr.msra.gmra.mxu3 %vm214_vm8, %v143_v11  ;;  %v1372_v11 = vld [vmem:[%s2039_s1 + $0xc8] sm:$0xff] }
 0x192   :  { %v208_v13 = vpop.f32.mrf.mxu2 }
 0x193   :  { %v209_v14 = vadd.f32 %v1436_v12, %v208_v13  ;;  %v178_v15 = vpop.f32.mrf.mxu1  ;;  %v145_v53 = vpop.f32.mrf.mxu0 }
 0x194   :  { %v179_v16 = vadd.f32 %v1435_v5, %v178_v15  ;;  %v146_v55 = vadd.f32 %v1719_v6, %v145_v53 }
 0x195   :  { %271 = vmatpush.msrb.mxu3 %v209_v14 }
 0x197   :  { %1329 = vmatpush.xpose.msk.msra.mxu3 %vm214_vm8, %v179_v16 }
 0x19a   :  { %v211_v18 = vpop.f32.mrf.mxu2 }
 0x19b   :  { %v212_v19 = vadd.f32 %v1436_v12, %v211_v18  ;;  %v365_v20 = vpop.f32.mrf.mxu1  ;;  %v1371_v12 = vld [vmem:[%s2039_s1 + $0xc0] sm:$0xff] }
 0x19c   :  { %v1731_v21 = vadd.f32 %v1437_v17, %v365_v20 }
 0x19d   :  { %332 = vmatpush.msrb.mxu0 %v212_v19 }
 0x1a2   :  { %v398_v23 = vpop.f32.mrf.mxu2 }
 0x1a3   :  { %v399_v24 = vadd.f32 %v1438_v22, %v398_v23  ;;  %v368_v25 = vpop.f32.mrf.mxu1 }
 0x1a4   :  { %v369_v29 = vadd.f32 %v1437_v17, %v368_v25 }
 0x1a5   :  { %1353 = vmatpush.xpose.msk.msra.mxu0 %vm214_vm8, %v399_v24 }
 0x1aa   :  { %v401_v26 = vpop.f32.mrf.mxu2 }
 0x1ab   :  { %v402_v27 = vadd.f32 %v1438_v22, %v401_v26  ;;  %v1441_v26 = vld [vmem:[%s2040_s2 + $0x6] ss:$0 sm:$0xff] }
 0x1ad   :  { %1356 = vmatpush.xpose.msk.msra.mxu1 %vm214_vm8, %v402_v27 }
 0x1b0   :  { %1357 = vmatmul.msk.f32.vlgmr.msra.gmra.mxu1 %vm214_vm8, %v369_v29 }
 0x1b1   :  { %641 = vmatpush.msrb.mxu1 %v1367_v28 }
 0x1b3   :  { %642 = vmatpush.msrb.mxu1 %v1366_v30 }
 0x1b5   :  { %643 = vmatpush.msrb.mxu1 %v1365_v31 }
 0x1b7   :  { %644 = vmatpush.msrb.mxu1 %v1364_v32  ;;  %v1397_v32 = vld [vmem:[%s2039_s1 + $0x78] sm:$0xff] }
 0x1b8   :  { %1369 = vmatmul.msk.f32.vlgmr.msrb.gmra.mxu1 %vm49_vm0, %v1689_v2 }
 0x1c0   :  { %1370 = vmatmul.msk.f32.gmra.mxu1 %vm49_vm0, %v1697_v4 }
 0x214   :  { %v238_v33 = vpop.f32.mrf.mxu3 }
 0x215   :  { %v241_v34 = vmul.f32 0.35355338, %v238_v33 }
 0x217   :  { %v242_v35 = vsel %vm214_vm8, %v241_v34, -inf }
 0x218   :  { %243 = vmax.xlane.f32.xlu2 %v242_v35  ;;  %v1394_v35 = vld [vmem:[%s2039_s1 + $0x60] sm:$0xff] }
 0x22d   :  { %v521_v36 = vpop.f32.mrf.mxu1 }
 0x22e   :  { %v524_v45 = vmul.f32 0.35355338, %v521_v36 }
 0x230   :  { %v525_v46 = vsel %vm214_vm8, %v524_v45, -inf }
 0x235   :  { %v646_v38 = vpop.f32.mrf.mxu1 }
 0x236   :  { %v1762_v39 = vadd.f32 %v1759_v37, %v646_v38 }
 0x23d   :  { %v649_v30 = vpop.f32.mrf.mxu1 }
 0x23e   :  { %v650_v33 = vadd.f32 %v1759_v37, %v649_v30 }
 0x28b   :  { %v244_v40 = vpop.xlane.xlu2 %243 }
 0x28c   :  { %v245_v41 = vsub.f32 %v241_v34, %v244_v40  ;;  %v1395_v34 = vld [vmem:[%s2039_s1 + $0x68] sm:$0xff] }
 0x28e   :  { %v246_v42 = vmul.f32 1.442695, %v245_v41 }
 0x290   :  { %1457 = vpow2.f32 %v246_v42 }
 0x296   :  { %v1458_v43 = vpop.eup %1457 }
 0x297   :  { %v248_v44 = vsel %vm214_vm8, %v1458_v43, 0.0 }
 0x298   :  { %249 = vadd.xlane.f32.xlu2 %v248_v44  ;;  %v1842_v44 = vld [vmem:[%s2040_s2 + $0x3] ss:$0 sm:$0xff] }
 0x2a0   :  { %526 = vmax.xlane.f32.xlu2 %v525_v46 }
 0x30b   :  { %v250_v47 = vpop.xlane.xlu2 %249 }
 0x30c   :  { %1459 = vrcp.f32 %v250_v47 }
 0x312   :  { %v1460_v48 = vpop.eup %1459 }
 0x313   :  { %v252_v49 = vmul.f32 %v1460_v48, %v1458_v43  ;;  %v527_v56 = vpop.xlane.xlu2 %526 }
 0x314   :  { %v528_v58 = vsub.f32 %v524_v45, %v527_v56  ;;  %v1359_v56 = vld [vmem:[%s2041_s3 + $0x8] sm:$0xff] }
 0x315   :  { %1328 = vmatmul.msk.f32.vlgmr.msrb.gmra.mxu3 %vm214_vm8, %v252_v49 }
 0x316   :  { %426 = vmatpush.msrb.mxu3 %v1349_v50  ;;  %v529_v59 = vmul.f32 1.442695, %v528_v58  ;;  %v1381_v58 = vld [vmem:[%s2039_s1 + $0x158] sm:$0xff] }
 0x318   :  { %427 = vmatpush.msrb.mxu3 %v1348_v51  ;;  %1461 = vpow2.f32 %v529_v59  ;;  %v1380_v59 = vld [vmem:[%s2039_s1 + $0x150] sm:$0xff] }
 0x31a   :  { %428 = vmatpush.msrb.mxu3 %v1347_v52  ;;  %v337_v52 = vld [vmem:[%s2041_s3] sm:$0xff] }
 0x31c   :  { %429 = vmatpush.msrb.mxu3 %v1346_v54 }
 0x31d   :  { %1330 = vmatmul.msk.f32.vlgmr.msra.gmra.mxu3 %vm214_vm8, %v146_v55 }
 0x31e   :  { %v1462_v0 = vpop.eup %1461  ;;  %582 = vmatpush.msra.mxu3 %v1359_v56 }
 0x31f   :  { %v531_v5 = vsel %vm214_vm8, %v1462_v0, 0.0 }
 0x325   :  { %1351 = vmatmul.msk.f32.vlgmr.msrb.gmra.mxu3 %vm49_vm0, %v1689_v2 }
 0x326   :  { %707 = vmatpush.msrb.mxu3 %v1381_v58 }
 0x328   :  { %708 = vmatpush.msrb.mxu3 %v1380_v59 }
 0x32d   :  { %1352 = vmatmul.msk.f32.gmra.mxu3 %vm49_vm0, %v1697_v4 }
 0x398   :  { %v1785_v57 = vpop.f32.mrf.mxu3 }
 0x3a0   :  { %v299_v60 = vpop.f32.mrf.mxu3 }
 0x3a1   :  { %v302_v61 = vmul.f32 0.35355338, %v299_v60  ;;  %v1404_v60 = vld [vmem:[%s2039_s1 + $0xf8] sm:$0xff] }
 0x3a3   :  { %v303_v62 = vsel %vm214_vm8, %v302_v61, -inf }
 0x3a4   :  { %304 = vmax.xlane.f32.xlu0 %v303_v62  ;;  %v1403_v62 = vld [vmem:[%s2039_s1 + $0xf0] sm:$0xff] }
 0x3a8   :  { %v431_v1 = vpop.f32.mrf.mxu3 }
 0x3a9   :  { %v432_v3 = vadd.f32 %v1440_v63, %v431_v1 }
 0x3ac   :  { %532 = vadd.xlane.f32.xlu0 %v531_v5 }
 0x3b0   :  { %v434_v6 = vpop.f32.mrf.mxu3 }
 0x3b1   :  { %v435_v7 = vadd.f32 %v1440_v63, %v434_v6  ;;  %v1402_v63 = vld [vmem:[%s2039_s1 + $0xe8] sm:$0xff] }
 0x3b3   :  { %554 = vmatpush.msra.mxu2 %v435_v7 }
 0x3b5   :  { %674 = vmatpush.msrb.mxu2 %v1374_v8 }
 0x3b7   :  { %675 = vmatpush.msrb.mxu2 %v1373_v9 }
 0x3b9   :  { %676 = vmatpush.msrb.mxu2 %v1372_v11 }
 0x3bb   :  { %677 = vmatpush.msrb.mxu2 %v1371_v12 }
 0x417   :  { %v305_v13 = vpop.xlane.xlu0 %304 }
 0x418   :  { %v306_v14 = vsub.f32 %v302_v61, %v305_v13 }
 0x41a   :  { %v307_v15 = vmul.f32 1.442695, %v306_v14 }
 0x41c   :  { %1463 = vpow2.f32 %v307_v15 }
 0x41f   :  { %v533_v16 = vpop.xlane.xlu0 %532 }
 0x420   :  { %1465 = vrcp.f32 %v533_v16 }
 0x422   :  { %v1464_v17 = vpop.eup %1463 }
 0x423   :  { %v309_v18 = vsel %vm214_vm8, %v1464_v17, 0.0 }
 0x424   :  { %310 = vadd.xlane.f32.xlu1 %v309_v18  ;;  %v1443_v18 = vld [vmem:[%s2040_s2 + $0xa] ss:$0 sm:$0xff] }
 0x426   :  { %v1466_v19 = vpop.eup %1465 }
 0x427   :  { %v535_v20 = vmul.f32 %v1466_v19, %v1462_v0  ;;  %v1401_v0 = vld [vmem:[%s2039_s1 + $0xe0] sm:$0xff] }
 0x429   :  { %1358 = vmatmul.msk.f32.vlgmr.msra.gmra.mxu2 %vm214_vm8, %v535_v20 }
 0x431   :  { %1376 = vmatmul.msk.f32.vlgmr.msrb.gmra.mxu2 %vm49_vm0, %v1689_v2 }
 0x439   :  { %1377 = vmatmul.msk.f32.gmra.mxu2 %vm49_vm0, %v1697_v4 }
 0x497   :  { %v311_v22 = vpop.xlane.xlu1 %310 }
 0x498   :  { %1467 = vrcp.f32 %v311_v22 }
 0x49e   :  { %v1468_v23 = vpop.eup %1467 }
 0x49f   :  { %v313_v24 = vmul.f32 %v1468_v23, %v1464_v17 }
 0x4a1   :  { %1331 = vmatmul.msk.f32.vlgmr.msrb.gmra.mxu0 %vm214_vm8, %v313_v24 }
 0x4a2   :  { %493 = vmatpush.msrb.mxu0 %v432_v3 }
 0x4a9   :  { %1354 = vmatmul.msk.f32.vlgmr.msra.gmra.mxu0 %vm214_vm8, %v1731_v21  ;;  %v1396_v21 = vld [vmem:[%s2039_s1 + $0x70] sm:$0xff] }
 0x4aa   :  { %611 = vmatpush.msra.mxu0 %v337_v52 }
 0x4ac   :  { %v1813_v25 = vpop.f32.mrf.mxu2 }
 0x4b4   :  { %v679_v27 = vpop.f32.mrf.mxu2 }
 0x4b5   :  { %v680_v28 = vadd.f32 %v1441_v26, %v679_v27 }
 0x4bc   :  { %v682_v29 = vpop.f32.mrf.mxu2 }
 0x4bd   :  { %v683_v31 = vadd.f32 %v1441_v26, %v682_v29 }
 0x4bf   :  { %1388 = vmatpush.xpose.msk.msra.mxu2 %vm214_vm8, %v683_v31  ;;  %v1410_v31 = vld [vmem:[%s2039_s1 + $0x170] sm:$0xff] }
 0x4c2   :  { %1389 = vmatmul.msk.f32.vlgmr.msra.gmra.mxu2 %vm214_vm8, %v650_v33  ;;  %v1409_v33 = vld [vmem:[%s2039_s1 + $0x168] sm:$0xff] }
 0x4c3   :  { %895 = vmatpush.msrb.mxu2 %v1397_v32  ;;  %v1444_v32 = vld [vmem:[%s2040_s2 + $0x7] ss:$0 sm:$0xff] }
 0x4c5   :  { %896 = vmatpush.msrb.mxu2 %v1396_v21  ;;  %v1408_v21 = vld [vmem:[%s2039_s1 + $0x160] sm:$0xff] }
 0x4c7   :  { %897 = vmatpush.msrb.mxu2 %v1395_v34 }
 0x4c9   :  { %898 = vmatpush.msrb.mxu2 %v1394_v35 }
 0x4ca   :  { %1399 = vmatmul.msk.f32.vlgmr.msrb.gmra.mxu2 %vm49_vm0, %v1689_v2 }
 0x4d2   :  { %1400 = vmatmul.msk.f32.gmra.mxu2 %vm49_vm0, %v1697_v4 }
 0x51e   :  { %v334_v36 = vpop.f32.mrf.mxu0 }
 0x526   :  { %v460_v37 = vpop.f32.mrf.mxu0 }
 0x527   :  { %v463_v38 = vmul.f32 0.35355338, %v460_v37 }
 0x529   :  { %v464_v40 = vsel %vm214_vm8, %v463_v38, -inf }
 0x52a   :  { %465 = vmax.xlane.f32.xlu1 %v464_v40 }
 0x545   :  { %v802_v41 = vpop.f32.mrf.mxu2 }
 0x546   :  { %v805_v42 = vmul.f32 0.35355338, %v802_v41  ;;  %v1391_v41 = vld [vmem:[%s2041_s3 + $0x10] sm:$0xff] }
 0x548   :  { %v806_v43 = vsel %vm214_vm8, %v805_v42, -inf }
 0x549   :  { %807 = vmax.xlane.f32.xlu1 %v806_v43 }
 0x54d   :  { %v900_v45 = vpop.f32.mrf.mxu2 }
 0x54e   :  { %v1845_v46 = vadd.f32 %v1842_v44, %v900_v45 }
 0x59d   :  { %v466_v47 = vpop.xlane.xlu1 %465 }
 0x59e   :  { %v467_v48 = vsub.f32 %v463_v38, %v466_v47  ;;  %v903_v38 = vpop.f32.mrf.mxu2 }
 0x59f   :  { %v904_v40 = vadd.f32 %v1842_v44, %v903_v38  ;;  %v1445_v44 = vld [vmem:[%s2040_s2 + $0xb] ss:$0 sm:$0xff]  ;;  %v1249_v38 = vld [vmem:[%s2049_s11 + $0x18] sm:$0xff] }
 0x5a0   :  { %v468_v49 = vmul.f32 1.442695, %v467_v48 }
 0x5a2   :  { %1469 = vpow2.f32 %v468_v49 }
 0x5a8   :  { %v1470_v50 = vpop.eup %1469 }
 0x5a9   :  { %v470_v51 = vsel %vm214_vm8, %v1470_v50, 0.0 }
 0x5aa   :  { %471 = vadd.xlane.f32.xlu2 %v470_v51 }
 0x5bc   :  { %v808_v3 = vpop.xlane.xlu1 %807 }
 0x5bd   :  { %v809_v6 = vsub.f32 %v805_v42, %v808_v3 }
 0x5bf   :  { %v810_v7 = vmul.f32 1.442695, %v809_v6 }
 0x61d   :  { %v472_v53 = vpop.xlane.xlu2 %471 }
 0x61e   :  { %1471 = vrcp.f32 %v472_v53 }
 0x61f   :  { %1473 = vpow2.f32 %v810_v7 }
 0x624   :  { %v1472_v54 = vpop.eup %1471 }
 0x625   :  { %v474_v55 = vmul.f32 %v1472_v54, %v1470_v50  ;;  %v1474_v12 = vpop.eup %1473 }
 0x626   :  { %v812_v13 = vsel %vm214_vm8, %v1474_v12, 0.0 }
 0x627   :  { %1355 = vmatmul.msk.f32.vlgmr.msrb.gmra.mxu0 %vm214_vm8, %v474_v55 }
 0x628   :  { %1385 = vmatpush.xpose.msk.msrb.mxu0 %vm214_vm8, %v680_v28  ;;  %v1411_v28 = vld [vmem:[%s2039_s1 + $0x178] sm:$0xff] }
 0x62f   :  { %1362 = vmatmul.msk.f32.vlgmr.msra.gmra.mxu0 %vm214_vm8, %v1785_v57  ;;  %v1379_v57 = vld [vmem:[%s2039_s1 + $0x148] sm:$0xff] }
 0x630   :  { %709 = vmatpush.msrb.mxu3 %v1379_v57 }
 0x637   :  { %1363 = vmatmul.msk.f32.gmra.mxu0 %vm214_vm8, %v334_v36 }
 0x63f   :  { %1386 = vmatmul.msk.f32.vlgmr.msrb.gmra.mxu0 %vm214_vm8, %v1762_v39  ;;  %v1378_v39 = vld [vmem:[%s2039_s1 + $0x140] sm:$0xff] }
 0x640   :  { %710 = vmatpush.msrb.mxu3 %v1378_v39 }
 0x6a4   :  { %v495_v61 = vpop.f32.mrf.mxu0 }
 0x6a5   :  { %1360 = vmatmul.msk.f32.vlgmr.msra.gmra.mxu3 %vm214_vm8, %v495_v61 }
 0x6a6   :  { %928 = vmatpush.msra.mxu3 %v1404_v60 }
 0x6a8   :  { %929 = vmatpush.msra.mxu3 %v1403_v62 }
 0x6aa   :  { %930 = vmatpush.msra.mxu3 %v1402_v63 }
 0x6ac   :  { %v1886_v1 = vpop.f32.mrf.mxu0  ;;  %931 = vmatpush.msra.mxu3 %v1401_v0 }
 0x6ad   :  { %1361 = vmatmul.msk.f32.gmra.mxu3 %vm214_vm8, %v1813_v25 }
 0x6b4   :  { %v1890_v5 = vpop.f32.mrf.mxu0 }
 0x6b5   :  { %1383 = vmatmul.msk.f32.vlgmr.msrb.gmra.mxu3 %vm49_vm0, %v1689_v2 }
 0x6bc   :  { %v741_v8 = vpop.f32.mrf.mxu0 }
 0x6bd   :  { %v744_v9 = vmul.f32 0.35355338, %v741_v8  ;;  %1384 = vmatmul.msk.f32.gmra.mxu3 %vm49_vm0, %v1697_v4 }
 0x6bf   :  { %v745_v11 = vsel %vm214_vm8, %v744_v9, -inf }
 0x6c0   :  { %746 = vmax.xlane.f32.xlu0 %v745_v11 }
 0x6c5   :  { %1406 = vmatmul.msk.f32.vlgmr.msra.gmra.mxu3 %vm49_vm0, %v1689_v2 }
 0x6c8   :  { %813 = vadd.xlane.f32.xlu0 %v812_v13 }
 0x6cd   :  { %1407 = vmatmul.msk.f32.gmra.mxu3 %vm49_vm0, %v1697_v4 }
 0x728   :  { %v1902_v14 = vpop.f32.mrf.mxu3 }
 0x729   :  { %v614_v56 = vadd.f32 %v1886_v1, %v1902_v14 }
 0x730   :  { %v1904_v15 = vpop.f32.mrf.mxu3 }
 0x731   :  { %v617_v57 = vadd.f32 %v1890_v5, %v1904_v15  ;;  %v1421_v15 = vld [vmem:[%s2041_s3 + $0x18] sm:$0xff] }
 0x733   :  { %v747_v16 = vpop.xlane.xlu0 %746 }
 0x734   :  { %v748_v17 = vsub.f32 %v744_v9, %v747_v16 }
 0x736   :  { %v749_v19 = vmul.f32 1.442695, %v748_v17 }
 0x738   :  { %1475 = vpow2.f32 %v749_v19  ;;  %v712_v20 = vpop.f32.mrf.mxu3  ;;  %v1194_v19 = vld [vmem:[%s2047_s9 + $0x18] sm:$0xff] }
 0x739   :  { %v713_v22 = vadd.f32 %v1443_v18, %v712_v20 }
 0x73b   :  { %v814_v23 = vpop.xlane.xlu0 %813  ;;  %774 = vmatpush.msra.mxu1 %v713_v22 }
 0x73c   :  { %1477 = vrcp.f32 %v814_v23  ;;  %v1193_v23 = vld [vmem:[%s2047_s9 + $0x10] sm:$0xff] }
 0x73d   :  { %863 = vmatpush.msrb.mxu1 %v1391_v41  ;;  %v1248_v41 = vld [vmem:[%s2049_s11 + $0x10] sm:$0xff] }
 0x73e   :  { %v1476_v24 = vpop.eup %1475 }
 0x73f   :  { %v751_v25 = vsel %vm214_vm8, %v1476_v24, 0.0 }
 0x740   :  { %752 = vadd.xlane.f32.xlu2 %v751_v25  ;;  %v715_v26 = vpop.f32.mrf.mxu3  ;;  %v1191_v25 = vld [vmem:[%s2047_s9] sm:$0xff] }
 0x741   :  { %v716_v27 = vadd.f32 %v1443_v18, %v715_v26  ;;  %v1446_v26 = vld [vmem:[%s2042_s4] ss:$0 sm:$0xff]  ;;  %s1526_s4 = smov 8  }
 0x742   :  { %v1478_v29 = vpop.eup %1477 }
 0x743   :  { %v816_v30 = vmul.f32 %v1478_v29, %v1474_v12  ;;  %835 = vmatpush.msra.mxu0 %v716_v27 }
 0x745   :  { %961 = vmatpush.msrb.mxu0 %v1411_v28 }
 0x746   :  { %1390 = vmatmul.msk.f32.vlgmr.msra.gmra.mxu0 %vm214_vm8, %v816_v30 }
 0x747   :  { %962 = vmatpush.msrb.mxu0 %v1410_v31 }
 0x748   :  { %v933_v34 = vpop.f32.mrf.mxu3 }
 0x749   :  { %963 = vmatpush.msrb.mxu0 %v1409_v33  ;;  %v934_v35 = vadd.f32 %v1444_v32, %v933_v34 }
 0x74b   :  { %964 = vmatpush.msrb.mxu0 %v1408_v21 }
 0x74e   :  { %1413 = vmatmul.msk.f32.vlgmr.msrb.gmra.mxu0 %vm49_vm0, %v1689_v2 }
 0x750   :  { %v936_v36 = vpop.f32.mrf.mxu3 }
 0x751   :  { %v937_v37 = vadd.f32 %v1444_v32, %v936_v36  ;;  %v1253_v36 = vld [vmem:[%s2049_s11 + $0x38] sm:$0xff] }
 0x752   :  { %1273 = vmatpush.msrb.mxu3 %v1253_v36  ;;  %v1450_v36 = vld [vmem:[%s2050_s12] ss:$0 sm:$0xff]  ;;  %s1525_s12 = smov 128  }
 0x753   :  { %1418 = vmatpush.xpose.msk.msra.mxu0 %vm214_vm8, %v937_v37  ;;  %v1251_v37 = vld [vmem:[%s2049_s11 + $0x28] sm:$0xff] }
 0x756   :  { %1414 = vmatmul.msk.f32.gmra.mxu0 %vm49_vm0, %v1697_v4 }
 0x75e   :  { %1419 = vmatmul.msk.f32.vlgmr.msra.gmra.mxu0 %vm214_vm8, %v904_v40 }
 0x7b3   :  { %v753_v42 = vpop.xlane.xlu2 %752 }
 0x7b4   :  { %1479 = vrcp.f32 %v753_v42 }
 0x7ba   :  { %v1480_v43 = vpop.eup %1479 }
 0x7bb   :  { %v755_v45 = vmul.f32 %v1480_v43, %v1476_v24  ;;  %v1192_v24 = vld [vmem:[%s2047_s9 + $0x8] sm:$0xff] }
 0x7bc   :  { %v1247_v43 = vld [vmem:[%s2049_s11 + $0x8] sm:$0xff] }
 0x7bd   :  { %1387 = vmatmul.msk.f32.vlgmr.msra.gmra.mxu1 %vm214_vm8, %v755_v45 }
 0x7be   :  { %1415 = vmatpush.xpose.msk.msra.mxu1 %vm214_vm8, %v934_v35 }
 0x7c3   :  { %v837_v47 = vpop.f32.mrf.mxu0 }
 0x7cb   :  { %v966_v48 = vpop.f32.mrf.mxu0 }
 0x7cc   :  { %v967_v49 = vadd.f32 %v1445_v44, %v966_v48 }
 0x7ce   :  { %1028 = vmatpush.msra.mxu2 %v967_v49 }
 0x7d0   :  { %1217 = vmatpush.msrb.mxu2 %v1194_v19 }
 0x7d2   :  { %1218 = vmatpush.msrb.mxu2 %v1193_v23 }
 0x7d3   :  { %v969_v50 = vpop.f32.mrf.mxu0 }
 0x7d4   :  { %v970_v51 = vadd.f32 %v1445_v44, %v969_v50  ;;  %1219 = vmatpush.msrb.mxu2 %v1192_v24 }
 0x7d6   :  { %1089 = vmatpush.msrb.mxu0 %v970_v51  ;;  %1220 = vmatpush.msrb.mxu2 %v1191_v25 }
 0x7db   :  { %v1056_v52 = vpop.f32.mrf.mxu0 }
 0x7dc   :  { %v1059_v53 = vmul.f32 0.35355338, %v1056_v52  ;;  %v1447_v52 = vld [vmem:[%s2048_s10] ss:$0 sm:$0xff] }
 0x7de   :  { %v1060_v54 = vsel %vm214_vm8, %v1059_v53, -inf }
 0x7df   :  { %1061 = vmax.xlane.f32.xlu2 %v1060_v54 }
 0x83a   :  { %v776_v55 = vpop.f32.mrf.mxu1 }
 0x83b   :  { %1392 = vmatmul.msk.f32.vlgmr.msrb.gmra.mxu1 %vm214_vm8, %v776_v55 }
 0x83c   :  { %1117 = vmatpush.msrb.mxu1 %v1421_v15 }
 0x843   :  { %1393 = vmatmul.msk.f32.gmra.mxu1 %vm214_vm8, %v837_v47  ;;  %v1246_v47 = vld [vmem:[%s2049_s11] sm:$0xff] }
 0x84b   :  { %1416 = vmatmul.msk.f32.vlgmr.msra.gmra.mxu1 %vm214_vm8, %v1845_v46 }
 0x852   :  { %v1062_v39 = vpop.xlane.xlu2 %1061 }
 0x853   :  { %v1063_v62 = vsub.f32 %v1059_v53, %v1062_v39 }
 0x855   :  { %v1064_v63 = vmul.f32 1.442695, %v1063_v62 }
 0x857   :  { %1481 = vpow2.f32 %v1064_v63 }
 0x85d   :  { %v1482_v46 = vpop.eup %1481 }
 0x85e   :  { %v1066_v7 = vsel %vm214_vm8, %v1482_v46, 0.0 }
 0x8b8   :  { %v865_v58 = vpop.f32.mrf.mxu1 }
 0x8b9   :  { %v871_v59 = vadd.f32 %v865_v58, %v614_v56 }
 0x8c0   :  { %v868_v60 = vpop.f32.mrf.mxu1 }
 0x8c1   :  { %v872_v61 = vadd.f32 %v868_v60, %v617_v57 }
 0x8c8   :  { %v995_v0 = vpop.f32.mrf.mxu1 }
 0x8c9   :  { %v998_v3 = vmul.f32 0.35355338, %v995_v0 }
 0x8cb   :  { %v999_v6 = vsel %vm214_vm8, %v998_v3, -inf }
 0x8cc   :  { %1000 = vmax.xlane.f32.xlu1 %v999_v6 }
 0x8d4   :  { %1067 = vadd.xlane.f32.xlu1 %v1066_v7 }
 0x93f   :  { %v1001_v1 = vpop.xlane.xlu1 %1000 }
 0x940   :  { %v1002_v8 = vsub.f32 %v998_v3, %v1001_v1 }
 0x942   :  { %v1003_v9 = vmul.f32 1.442695, %v1002_v8 }
 0x944   :  { %1483 = vpow2.f32 %v1003_v9 }
 0x947   :  { %v1068_v5 = vpop.xlane.xlu1 %1067 }
 0x948   :  { %1485 = vrcp.f32 %v1068_v5 }
 0x94a   :  { %v1484_v11 = vpop.eup %1483 }
 0x94b   :  { %v1005_v12 = vsel %vm214_vm8, %v1484_v11, 0.0 }
 0x94c   :  { %1006 = vadd.xlane.f32.xlu0 %v1005_v12 }
 0x94e   :  { %v1486_v13 = vpop.eup %1485 }
 0x94f   :  { %v1070_v14 = vmul.f32 %v1486_v13, %v1482_v46 }
 0x951   :  { %1420 = vmatmul.msk.f32.vlgmr.msrb.gmra.mxu0 %vm214_vm8, %v1070_v14 }
 0x9bf   :  { %v1007_v16 = vpop.xlane.xlu0 %1006 }
 0x9c0   :  { %1487 = vrcp.f32 %v1007_v16 }
 0x9c6   :  { %v1488_v17 = vpop.eup %1487 }
 0x9c7   :  { %v1009_v18 = vmul.f32 %v1488_v17, %v1484_v11 }
 0x9c9   :  { %1417 = vmatmul.msk.f32.vlgmr.msra.gmra.mxu2 %vm214_vm8, %v1009_v18 }
 0x9ce   :  { %v1091_v22 = vpop.f32.mrf.mxu0 }
 0xa4c   :  { %v1030_v20 = vpop.f32.mrf.mxu2 }
 0xa4d   :  { %1422 = vmatmul.msk.f32.vlgmr.msrb.gmra.mxu1 %vm214_vm8, %v1030_v20 }
 0xa55   :  { %1423 = vmatmul.msk.f32.gmra.mxu1 %vm214_vm8, %v1091_v22 }
 0xaca   :  { %v1119_v27 = vpop.f32.mrf.mxu1 }
 0xacb   :  { %v1125_v28 = vadd.f32 %v1119_v27, %v871_v59 }
 0xacd   :  { %v1131_v29 = vadd.f32 %v1446_v26, %v1125_v28 }
 0xacf   :  { %v1133_v30 = vadd.f32 %v1131_v29, %v1689_v2  ;;  %v1252_v2 = vld [vmem:[%s2049_s11 + $0x30] sm:$0xff] }
 0xad0   :  { %1274 = vmatpush.msrb.mxu3 %v1252_v2 }
 0xad1   :  { %1424 = vmatmul.msk.f32.vlgmr.msrb.gmra.mxu2 %vm49_vm0, %v1133_v30  ;;  %v1137_v31 = vsel %vm49_vm0, %v1133_v30, 0.0 }
 0xad2   :  { %1138 = vadd.xlane.f32.xlu2 %v1137_v31  ;;  %v1122_v32 = vpop.f32.mrf.mxu1  ;;  %1275 = vmatpush.msrb.mxu3 %v1251_v37 }
 0xad3   :  { %v1126_v33 = vadd.f32 %v1122_v32, %v872_v61 }
 0xad5   :  { %v1132_v21 = vadd.f32 %v1446_v26, %v1126_v33 }
 0xad7   :  { %v1134_v34 = vadd.f32 %v1132_v21, %v1697_v4  ;;  %v1250_v4 = vld [vmem:[%s2049_s11 + $0x20] sm:$0xff] }
 0xad8   :  { %1276 = vmatpush.msrb.mxu3 %v1250_v4 }
 0xad9   :  { %1425 = vmatmul.msk.f32.gmra.mxu2 %vm49_vm0, %v1134_v34  ;;  %v1140_v35 = vsel %vm49_vm0, %v1134_v34, 0.0 }
 0xada   :  { %1141 = vadd.xlane.f32.xlu0 %v1140_v35  ;;  %1277 = vmatpush.msrb.mxu3 %v1249_v38  ;;  %v1449_v35 = vld [vmem:[%s2046_s8] ss:$0 sm:$0xff]  ;;  %s1298_s8 = sshll.u32 %s2051_s13, 4  ;;  %s1299_s8 = int_to_ptr.hbm [resolvable:$true] %s1298_s8 }
 0xadc   :  { %1278 = vmatpush.msrb.mxu3 %v1248_v41 }
 0xade   :  { %1279 = vmatpush.msrb.mxu3 %v1247_v43 }
 0xae0   :  { %1280 = vmatpush.msrb.mxu3 %v1246_v47 }
 0xb45   :  { %v1139_v40 = vpop.xlane.xlu2 %1138 }
 0xb46   :  { %v1143_v42 = vmul.f32 %v1139_v40, %v1605_v10 }
 0xb48   :  { %v2003_v45 = vsub.f32 %v1133_v30, %v1143_v42 }
 0xb4a   :  { %v1147_v44 = vmul.f32 %v2003_v45, %v2003_v45 }
 0xb4c   :  { %v1149_v48 = vsel %vm49_vm0, %v1147_v44, 0.0 }
 0xb4d   :  { %1150 = vadd.xlane.f32.xlu1 %v1149_v48  ;;  %v1142_v49 = vpop.xlane.xlu0 %1141 }
 0xb4e   :  { %v1144_v50 = vmul.f32 %v1142_v49, %v1605_v10 }
 0xb50   :  { %v2012_v51 = vsub.f32 %v1134_v34, %v1144_v50 }
 0xb52   :  { %v1148_v53 = vmul.f32 %v2012_v51, %v2012_v51 }
 0xb54   :  { %v1222_v54 = vpop.f32.mrf.mxu2  ;;  %v1152_v55 = vsel %vm49_vm0, %v1148_v53, 0.0 }
 0xb55   :  { %v1223_v56 = vadd.f32 %v1447_v52, %v1222_v54  ;;  %1153 = vadd.xlane.f32.xlu2 %v1152_v55 }
 0xb57   :  { %v1230_v58 = vmul.f32 0.044715, %v1223_v56  ;;  %v1228_v1 = vmul.f32 0.5, %v1223_v56 }
 0xb59   :  { %v1232_v59 = vmul.f32 %v1230_v58, %v1223_v56 }
 0xb5b   :  { %v1234_v57 = vmul.f32 %v1232_v59, %v1223_v56 }
 0xb5c   :  { %v1225_v39 = vpop.f32.mrf.mxu2 }
 0xb5d   :  { %v1236_v60 = vadd.f32 %v1234_v57, %v1223_v56  ;;  %v1226_v61 = vadd.f32 %v1447_v52, %v1225_v39 }
 0xb5f   :  { %v1238_v62 = vmul.f32 0.7978846, %v1236_v60  ;;  %v1231_v63 = vmul.f32 0.044715, %v1226_v61  ;;  %v1229_v11 = vmul.f32 0.5, %v1226_v61 }
 0xb61   :  { %1489 = vtanh.f32 %v1238_v62  ;;  %v1233_v0 = vmul.f32 %v1231_v63, %v1226_v61 }
 0xb63   :  { %v1235_v3 = vmul.f32 %v1233_v0, %v1226_v61 }
 0xb65   :  { %v1237_v6 = vadd.f32 %v1235_v3, %v1226_v61 }
 0xb67   :  { %v1490_v46 = vpop.eup %1489  ;;  %v1239_v7 = vmul.f32 0.7978846, %v1237_v6 }
 0xb68   :  { %v1242_v8 = vadd.f32 1.0, %v1490_v46 }
 0xb69   :  { %1491 = vtanh.f32 %v1239_v7 }
 0xb6a   :  { %v1244_v9 = vmul.f32 %v1242_v8, %v1228_v1 }
 0xb6c   :  { %1426 = vmatmul.msk.f32.vlgmr.msrb.gmra.mxu3 %vm1258_vm9, %v1244_v9 }
 0xb6f   :  { %v1492_v5 = vpop.eup %1491 }
 0xb70   :  { %v1243_v12 = vadd.f32 1.0, %v1492_v5 }
 0xb72   :  { %v1245_v13 = vmul.f32 %v1243_v12, %v1229_v11 }
 0xb74   :  { %1427 = vmatmul.msk.f32.gmra.mxu3 %vm1258_vm9, %v1245_v13 }
 0xbc0   :  { %v1151_v14 = vpop.xlane.xlu1 %1150 }
 0xbc1   :  { %v1155_v15 = vmul.f32 %v1151_v14, %v1605_v10 }
 0xbc3   :  { %v1157_v16 = vadd.f32 1e-06, %v1155_v15 }
 0xbc5   :  { %1493 = vrsqrt.f32 %v1157_v16  ;;  %vm1165_vm11 = vweird.f32 %v1157_v16 }
 0xbc8   :  { %v1154_v17 = vpop.xlane.xlu2 %1153 }
 0xbc9   :  { %v1156_v18 = vmul.f32 %v1154_v17, %v1605_v10  ;;  %v1448_v10 = vld [vmem:[%s2045_s7] ss:$0 sm:$0xff]  ;;  %s1524_s7 = smov [#allocation2]  }
 0xbca   :  { %s1296_s0 = sshll.u32 %s1524_s7, 4  ;;  %s1297_s0 = int_to_ptr.vmem [resolvable:$true] %s1296_s0 }
 0xbcb   :  { %v1158_v19 = vadd.f32 1e-06, %v1156_v18  ;;  %v1494_v20 = vpop.eup %1493 }
 0xbcc   :  { %v1160_v22 = vmul.f32 %v1494_v20, %v1157_v16  ;;  %vm1166_vm10 = vweird.f32 %v1494_v20 }
 0xbcd   :  { %1495 = vrsqrt.f32 %v1158_v19  ;;  %vm1167_vm12 = vmor %vm1165_vm11, %vm1166_vm10  ;;  %vm1175_vm14 = vweird.f32 %v1158_v19 }
 0xbce   :  { %v1161_v23 = vmul.f32 %v1494_v20, %v1160_v22 }
 0xbd0   :  { %v1162_v25 = vmul.f32 0.5, %v1161_v23 }
 0xbd2   :  { %v1163_v27 = vsub.f32 1.5, %v1162_v25 }
 0xbd3   :  { %v1496_v24 = vpop.eup %1495 }
 0xbd4   :  { %v1170_v26 = vmul.f32 %v1496_v24, %v1158_v19  ;;  %v1164_v29 = vmul.f32 %v1494_v20, %v1163_v27  ;;  %vm1176_vm13 = vweird.f32 %v1496_v24 }
 0xbd5   :  { %vm1177_vm15 = vmor %vm1175_vm14, %vm1176_vm13 }
 0xbd6   :  { %v1171_v28 = vmul.f32 %v1496_v24, %v1170_v26  ;;  %v1168_v31 = vsel %vm1167_vm12, %v1494_v20, %v1164_v29 }
 0xbd7   :  { %v1179_v33 = vmul.f32 %v1168_v31, %v2003_v45 }
 0xbd8   :  { %v1172_v30 = vmul.f32 0.5, %v1171_v28 }
 0xbd9   :  { %v1184_v34 = vmul.f32 %v1448_v10, %v1179_v33 }
 0xbda   :  { %v1173_v32 = vsub.f32 1.5, %v1172_v30 }
 0xbdb   :  { %v1189_v4 = vadd.f32 %v1449_v35, %v1184_v34 }
 0xbdc   :  { %v1174_v21 = vmul.f32 %v1496_v24, %v1173_v32 }
 0xbde   :  { %v1178_v2 = vsel %vm1177_vm15, %v1496_v24, %v1174_v21 }
 0xbdf   :  { %v1180_v40 = vmul.f32 %v1178_v2, %v2012_v51 }
 0xbe1   :  { %v1185_v42 = vmul.f32 %v1448_v10, %v1180_v40 }
 0xbe3   :  { %v1190_v45 = vadd.f32 %v1449_v35, %v1185_v42 }
 0xbef   :  { %v1282_v37 = vpop.f32.mrf.mxu3 }
 0xbf0   :  { %v1283_v38 = vadd.f32 %v1450_v36, %v1282_v37 }
 0xbf2   :  { %v1288_v41 = vadd.f32 %v1283_v38, %v1189_v4 }
 0xbf4   :  { %1290 = vst.msk [vmem:[#allocation2] sm:$0xff] %vm49_vm0, %v1288_v41 }
 0xbf7   :  { %v1285_v43 = vpop.f32.mrf.mxu3 }
 0xbf8   :  { %v1286_v47 = vadd.f32 %v1450_v36, %v1285_v43 }
 0xbfa   :  { %v1289_v44 = vadd.f32 %v1286_v47, %v1190_v45 }
 0xbfc   :  { %1291 = vst.msk [vmem:[#allocation2 + $0x8] sm:$0xff] %vm49_vm0, %v1289_v44 }
 0xbfd   :  { %1304 = dma.vmem_to_hbm [thread:$0]  %s1297_s0, 256, %s1299_s8, [#allocation3], %s1525_s12, %s1525_s12, %s1526_s4  }
 0xbfe   :  { %1521 = dma.done.wait [#allocation3], 256  }
 0xbff   :  { %1522 = vsyncadd [#allocation3], 4294967040 }
 0xc00   :  { %1309 = vsyncpa [#allocation3], 1 }

</bundles_post_ra>
